<compile_context>
chip_gen: v5e
topology: v5e:2x2
jax: 0.10.0
libtpu: 0.0.40
codegen_flags: <defaults>
</compile_context>

<pallas_src>
import jax
import jax.numpy as jnp
from jax.experimental import pallas as pl
from jax.experimental.pallas import tpu as pltpu


def _round_up(x, m):
    return (x + m - 1) // m * m


def _num_tensorcores() -> int:
    """Best-effort TensorCore-per-chip count (v7x: 2). Safe fallback: 1."""
    try:
        info = pltpu.get_tpu_info()
        for attr in ("num_cores", "core_count", "tensorcore_count"):
            v = getattr(info, attr, None)
            if isinstance(v, int) and v > 0:
                return int(v)
    except Exception:
        pass
    return 1


# ------------------------------- Wrapper ------------------------------------

def refiner_forward(stage, params_in, params, *, num_options, param_size,
                    max_tile_n=1024, compute_dtype=jnp.bfloat16):
    """Refiner forward. params: dict from init_refiner_params."""
    N, P = params_in.shape
    assert P == param_size
    H = params["w1"].shape[1]
    assert H % 128 == 0, "hidden_size must be a multiple of 128 (TPU lanes)"
    KP = num_options * param_size
    KPp = _round_up(KP, 128)          # lane-padded output feature dim
    W = max(H, KPp)                   # common (lane-padded) column width

    f32 = jnp.float32
    cdt = compute_dtype
    hi = jax.lax.Precision.HIGHEST    # wrapper-side folds must not add error

    # ---- stage-dependent algebraic folds (exact, done once per call) ----
    emb = params["stage_embedding"][stage].reshape(1, H).astype(f32)
    scale = params["output_scales"][stage].astype(f32)

    bm1_f = params["bm1"] + jnp.dot(emb, params["wm1"], precision=hi)
    bout_f = (params["bout"]
              + params["biases"][stage].reshape(1, KP)
              + jnp.dot(emb, params["wout"], precision=hi)) * scale
    wout_s = params["wout"] * scale

    # ---- consolidate operands: one weight stack, one bias stack ----
    P16 = _round_up(P, 16)            # 16-row alignment (bf16 sublane packing)
    oW1, oW2 = 0, P16
    oM1, oM2, oWO = P16 + H, P16 + 2 * H, P16 + 3 * H
    Rw = P16 + 4 * H

    def pad_w(w):
        r, c = w.shape
        return jnp.zeros((_round_up(r, 16), W), f32).at[:r, :c].set(w)

    def pad_b(b):
        return jnp.zeros((1, W), f32).at[:, :b.shape[1]].set(b)

    wstack = jnp.concatenate(
        [pad_w(params["w1"]), pad_w(params["w2"]),
         pad_w(params["wm1"]), pad_w(params["wm2"]), pad_w(wout_s)],
        axis=0).astype(cdt)                                   # [Rw, W] bf16/f32
    bstack = jnp.concatenate(
        [pad_b(params["b1"]), pad_b(params["b2"]),
         pad_b(bm1_f), pad_b(params["bm2"]), pad_b(bout_f),
         jnp.zeros((3, W), f32)], axis=0)                     # [8, W] f32

    # ---- batch tile: one big tile on single-TC chips, split on v7x ----
    tn = max(8, min(max_tile_n, _round_up(N, 8)))
    ntc = max(1, min(_num_tensorcores(), 2))
    if ntc > 1 and N > 8 * ntc:
        tn = max(8, min(tn, _round_up(pl.cdiv(N, ntc), 8)))
    grid = (pl.cdiv(N, tn),)

    # ---- kernel: fused 5-layer MLP over one batch tile ----
    def kernel(x_ref, w_ref, b_ref, o_ref):
        x = x_ref[...]                                        # [tn, P] f32
        h = jnp.dot(x.astype(cdt), w_ref[oW1:oW1 + P, :H],
                    preferred_element_type=jnp.float32) + b_ref[0:1, :H]
        h = jnp.maximum(h, 0.0)
        h = jnp.dot(h.astype(cdt), w_ref[oW2:oW2 + H, :H],
                    preferred_element_type=jnp.float32) + b_ref[1:2, :H]
        h = jnp.maximum(h, 0.0)
        h = jnp.dot(h.astype(cdt), w_ref[oM1:oM1 + H, :H],
                    preferred_element_type=jnp.float32) + b_ref[2:3, :H]
        h = jnp.maximum(h, 0.0)
        h = jnp.dot(h.astype(cdt), w_ref[oM2:oM2 + H, :H],
                    preferred_element_type=jnp.float32) + b_ref[3:4, :H]
        h = jnp.maximum(h, 0.0)
        # out_layer with scale + stage bias + embedding already folded in
        o_ref[...] = jnp.dot(h.astype(cdt), w_ref[oWO:oWO + H, :KPp],
                             preferred_element_type=jnp.float32) + b_ref[4:5, :KPp]

    # Advisory cost hint so XLA can schedule/overlap around the custom call.
    itm = jnp.dtype(cdt).itemsize
    cost = pl.CostEstimate(
        flops=2 * N * (P * H + 3 * H * H + H * KPp),
        transcendentals=0,
        bytes_accessed=4 * N * (P + KPp) + itm * Rw * W + 4 * 8 * W)

    out_flat = pl.pallas_call(
        kernel,
        out_shape=jax.ShapeDtypeStruct((N, KPp), f32),
        grid=grid,
        in_specs=[
            pl.BlockSpec((tn, P), lambda i: (i, 0)),          # x batch tile
            pl.BlockSpec((Rw, W), lambda i: (0, 0)),          # stacked weights
            pl.BlockSpec((8, W), lambda i: (0, 0)),           # stacked biases
        ],
        out_specs=pl.BlockSpec((tn, KPp), lambda i: (i, 0)),
        compiler_params=pltpu.CompilerParams(
            dimension_semantics=("parallel",)),
        cost_estimate=cost,
    )(params_in, wstack, bstack)

    # Single fused XLA epilogue: drop lane padding, reshape to [N, K, P] and
    # add the exact-f32 residual (replaces the in-kernel replication matmul).
    return (out_flat[:, :KP].reshape(N, num_options, param_size)
            + params_in[:, None, :])


# ------------------------ Parameter initialization ---------------------------

def init_refiner_params(key, param_size, num_stages, num_options, hidden_size):
    ks = jax.random.split(key, 12)
    P, H, K, S = param_size, hidden_size, num_options, num_stages
    n = jax.random.normal

    def lin(kw, kb, fan_in, fan_out):
        # deterministic synthetic init; weight stored as [in, out] (= W.T)
        w = 0.1 * n(kw, (fan_in, fan_out), jnp.float32)
        b = 0.1 * n(kb, (1, fan_out), jnp.float32)
        return w, b

    w1, b1 = lin(ks[0], ks[1], P, H)
    w2, b2 = lin(ks[2], ks[3], H, H)
    wm1, bm1 = lin(ks[4], ks[5], H, H)
    wm2, bm2 = lin(ks[6], ks[7], H, H)
    wout, bout = lin(ks[8], ks[9], H, K * P)

    return dict(
        stage_embedding=n(ks[10], (S, H), jnp.float32),
        biases=n(ks[11], (S, K, P), jnp.float32),
        output_scales=0.1 * jnp.ones((S,), jnp.float32),
        w1=w1, b1=b1, w2=w2, b2=b2,
        wm1=wm1, bm1=bm1, wm2=wm2, bm2=bm2,
        wout=wout, bout=bout,
    )


# ------------------------- Pure-JAX reference -------------------------------

def refiner_reference(stage, x, p, *, num_options, param_size):
    relu = lambda v: jnp.maximum(v, 0.0)
    emb = p["stage_embedding"][stage]
    h = relu(x @ p["w1"] + p["b1"])
    h = relu(h @ p["w2"] + p["b2"])
    h = h + emb
    h = relu(h @ p["wm1"] + p["bm1"])
    h = relu(h @ p["wm2"] + p["bm2"])
    h = h + emb
    out = h @ p["wout"] + p["bout"]
    out = out.reshape(x.shape[0], num_options, param_size)
    out = out + p["biases"][stage]
    return out * p["output_scales"][stage] + x[:, None]


# --------------------------------- Main --------------------------------------

if __name__ == "__main__":
    PARAM_SIZE = 16
    HIDDEN = 128          # multiple of 128 lanes
    NUM_OPTIONS = 4
    NUM_STAGES = 3
    N = 512
    STAGE = 1

    key = jax.random.PRNGKey(0)
    k_params, k_x = jax.random.split(key)
    params = init_refiner_params(k_params, PARAM_SIZE, NUM_STAGES,
                                 NUM_OPTIONS, HIDDEN)
    x = jax.random.normal(k_x, (N, PARAM_SIZE), jnp.float32)

    ref = refiner_reference(STAGE, x, params,
                            num_options=NUM_OPTIONS, param_size=PARAM_SIZE)

    # f32 compute path: tight check (tolerance allows the exact-but-reordered
    # f32 summation introduced by the embedding / scale bias folds).
    out_f32 = refiner_forward(STAGE, x, params,
                              num_options=NUM_OPTIONS, param_size=PARAM_SIZE,
                              compute_dtype=jnp.float32)
    out_f32 = jax.block_until_ready(out_f32)
    assert out_f32.shape == (N, NUM_OPTIONS, PARAM_SIZE)
    assert jnp.allclose(out_f32, ref, atol=2e-4, rtol=2e-4), (
        float(jnp.max(jnp.abs(out_f32 - ref))))

    # bf16 compute path (default, fast path on v6e/v7x): looser tolerance.
    out_bf16 = refiner_forward(STAGE, x, params,
                               num_options=NUM_OPTIONS, param_size=PARAM_SIZE)
    out_bf16 = jax.block_until_ready(out_bf16)
    assert out_bf16.shape == (N, NUM_OPTIONS, PARAM_SIZE)
    assert jnp.allclose(out_bf16, ref, atol=3e-2, rtol=3e-2), (
        float(jnp.max(jnp.abs(out_bf16 - ref))))

    print("KERNEL_OK")
</pallas_src>

<mosaic_0001>
module attributes {stable_mosaic.version = 11 : i64} {
  func.func @kernel(%arg0: i32, %arg1: memref<512x16xf32, #tpu.memory_space<vmem>>, %arg2: memref<528x128xf32, #tpu.memory_space<vmem>>, %arg3: memref<8x128xf32, #tpu.memory_space<vmem>>, %arg4: memref<512x128xf32, #tpu.memory_space<vmem>>) attributes {dimension_semantics = [#tpu.dimension_semantics<parallel>], iteration_bounds = array<i64: 1>, scalar_prefetch = 0 : i64, scratch_operands = 0 : i64, tpu.core_type = #tpu.core_type<tc>, window_params = [{transform_indices = @transform_0, window_bounds = array<i64: 512, 16>}, {pipeline_mode = #tpu.pipeline_mode<synchronous>, transform_indices = @transform_1, window_bounds = array<i64: 528, 128>}, {pipeline_mode = #tpu.pipeline_mode<synchronous>, transform_indices = @transform_2, window_bounds = array<i64: 8, 128>}, {transform_indices = @transform_3, window_bounds = array<i64: 512, 128>}]} {
    %c0 = arith.constant 0 : index
    %c0_0 = arith.constant 0 : index
    %0 = vector.load %arg1[%c0, %c0_0] : memref<512x16xf32, #tpu.memory_space<vmem>>, vector<512x16xf32>
    %c0_1 = arith.constant 0 : index
    %c0_2 = arith.constant 0 : index
    %1 = vector.load %arg2[%c0_1, %c0_2] : memref<528x128xf32, #tpu.memory_space<vmem>>, vector<16x128xf32>
    %cst = arith.constant dense<0.000000e+00> : vector<512x128xf32>
    %2 = tpu.matmul %0, %1, %cst {dimension_numbers = #tpu.dot_dimension_numbers<[1], [0], [0], [1], [0, 0, 1, 1], [], []>} : vector<512x16xf32>, vector<16x128xf32>, vector<512x128xf32> -> vector<512x128xf32>
    %c0_3 = arith.constant 0 : index
    %c0_4 = arith.constant 0 : index
    %3 = vector.load %arg3[%c0_3, %c0_4] : memref<8x128xf32, #tpu.memory_space<vmem>>, vector<1x128xf32>
    %4 = vector.broadcast %3 : vector<1x128xf32> to vector<512x128xf32>
    %5 = arith.addf %2, %4 : vector<512x128xf32>
    %cst_5 = arith.constant 0.000000e+00 : f32
    %6 = vector.broadcast %cst_5 : f32 to vector<512x128xf32>
    %7 = arith.maximumf %5, %6 : vector<512x128xf32>
    %c16 = arith.constant 16 : index
    %c0_6 = arith.constant 0 : index
    %8 = vector.load %arg2[%c16, %c0_6] : memref<528x128xf32, #tpu.memory_space<vmem>>, vector<128x128xf32>
    %cst_7 = arith.constant dense<0.000000e+00> : vector<512x128xf32>
    %9 = tpu.matmul %7, %8, %cst_7 {dimension_numbers = #tpu.dot_dimension_numbers<[1], [0], [0], [1], [0, 0, 1, 1], [], []>} : vector<512x128xf32>, vector<128x128xf32>, vector<512x128xf32> -> vector<512x128xf32>
    %c1 = arith.constant 1 : index
    %c0_8 = arith.constant 0 : index
    %10 = vector.load %arg3[%c1, %c0_8] : memref<8x128xf32, #tpu.memory_space<vmem>>, vector<1x128xf32>
    %11 = vector.broadcast %10 : vector<1x128xf32> to vector<512x128xf32>
    %12 = arith.addf %9, %11 : vector<512x128xf32>
    %cst_9 = arith.constant 0.000000e+00 : f32
    %13 = vector.broadcast %cst_9 : f32 to vector<512x128xf32>
    %14 = arith.maximumf %12, %13 : vector<512x128xf32>
    %c144 = arith.constant 144 : index
    %c0_10 = arith.constant 0 : index
    %15 = vector.load %arg2[%c144, %c0_10] : memref<528x128xf32, #tpu.memory_space<vmem>>, vector<128x128xf32>
    %cst_11 = arith.constant dense<0.000000e+00> : vector<512x128xf32>
    %16 = tpu.matmul %14, %15, %cst_11 {dimension_numbers = #tpu.dot_dimension_numbers<[1], [0], [0], [1], [0, 0, 1, 1], [], []>} : vector<512x128xf32>, vector<128x128xf32>, vector<512x128xf32> -> vector<512x128xf32>
    %c2 = arith.constant 2 : index
    %c0_12 = arith.constant 0 : index
    %17 = vector.load %arg3[%c2, %c0_12] : memref<8x128xf32, #tpu.memory_space<vmem>>, vector<1x128xf32>
    %18 = vector.broadcast %17 : vector<1x128xf32> to vector<512x128xf32>
    %19 = arith.addf %16, %18 : vector<512x128xf32>
    %cst_13 = arith.constant 0.000000e+00 : f32
    %20 = vector.broadcast %cst_13 : f32 to vector<512x128xf32>
    %21 = arith.maximumf %19, %20 : vector<512x128xf32>
    %c272 = arith.constant 272 : index
    %c0_14 = arith.constant 0 : index
    %22 = vector.load %arg2[%c272, %c0_14] : memref<528x128xf32, #tpu.memory_space<vmem>>, vector<128x128xf32>
    %cst_15 = arith.constant dense<0.000000e+00> : vector<512x128xf32>
    %23 = tpu.matmul %21, %22, %cst_15 {dimension_numbers = #tpu.dot_dimension_numbers<[1], [0], [0], [1], [0, 0, 1, 1], [], []>} : vector<512x128xf32>, vector<128x128xf32>, vector<512x128xf32> -> vector<512x128xf32>
    %c3 = arith.constant 3 : index
    %c0_16 = arith.constant 0 : index
    %24 = vector.load %arg3[%c3, %c0_16] : memref<8x128xf32, #tpu.memory_space<vmem>>, vector<1x128xf32>
    %25 = vector.broadcast %24 : vector<1x128xf32> to vector<512x128xf32>
    %26 = arith.addf %23, %25 : vector<512x128xf32>
    %cst_17 = arith.constant 0.000000e+00 : f32
    %27 = vector.broadcast %cst_17 : f32 to vector<512x128xf32>
    %28 = arith.maximumf %26, %27 : vector<512x128xf32>
    %c400 = arith.constant 400 : index
    %c0_18 = arith.constant 0 : index
    %29 = vector.load %arg2[%c400, %c0_18] : memref<528x128xf32, #tpu.memory_space<vmem>>, vector<128x128xf32>
    %cst_19 = arith.constant dense<0.000000e+00> : vector<512x128xf32>
    %30 = tpu.matmul %28, %29, %cst_19 {dimension_numbers = #tpu.dot_dimension_numbers<[1], [0], [0], [1], [0, 0, 1, 1], [], []>} : vector<512x128xf32>, vector<128x128xf32>, vector<512x128xf32> -> vector<512x128xf32>
    %c4 = arith.constant 4 : index
    %c0_20 = arith.constant 0 : index
    %31 = vector.load %arg3[%c4, %c0_20] : memref<8x128xf32, #tpu.memory_space<vmem>>, vector<1x128xf32>
    %32 = vector.broadcast %31 : vector<1x128xf32> to vector<512x128xf32>
    %33 = arith.addf %30, %32 : vector<512x128xf32>
    %c0_21 = arith.constant 0 : index
    %c0_22 = arith.constant 0 : index
    %34 = vector.load %arg4[%c0_21, %c0_22] : memref<512x128xf32, #tpu.memory_space<vmem>>, vector<512x128xf32>
    tpu.vector_store %arg4[%c0_21, %c0_22], %33 {strides = array<i32>} : memref<512x128xf32, #tpu.memory_space<vmem>>, vector<512x128xf32>,
    return
  }
  func.func @transform_0(%arg0: i32) -> (i32, i32) {
    %c0_i32 = arith.constant 0 : i32
    %c0_i32_0 = arith.constant 0 : i32
    return %arg0, %c0_i32 : i32, i32
  }
  func.func @transform_1(%arg0: i32) -> (i32, i32) {
    %c0_i32 = arith.constant 0 : i32
    %c0_i32_0 = arith.constant 0 : i32
    %c0_i32_1 = arith.constant 0 : i32
    return %c0_i32, %c0_i32_0 : i32, i32
  }
  func.func @transform_2(%arg0: i32) -> (i32, i32) {
    %c0_i32 = arith.constant 0 : i32
    %c0_i32_0 = arith.constant 0 : i32
    %c0_i32_1 = arith.constant 0 : i32
    return %c0_i32, %c0_i32_0 : i32, i32
  }
  func.func @transform_3(%arg0: i32) -> (i32, i32) {
    %c0_i32 = arith.constant 0 : i32
    %c0_i32_0 = arith.constant 0 : i32
    return %arg0, %c0_i32 : i32, i32
  }
}

</mosaic_0001>

<bundles_post_ra>
// kernel: tpu_custom_call.1
= control target key start
LH: loop header
LB: loop body
LE: loop exit
PB: predicated region body
PF: predicated region fallthrough
CT: control target
= control target key end

     0   :  { %vm83_vm0 = vcmask 130048   ;;  %s2825_s0 = inlined_call_operand.vmem [shape: f32[512,16], index: 0, kind: input, shape index: {}]   ;;  %s2826_s1 = inlined_call_operand.vmem [shape: f32[528,128], index: 1, kind: input, shape index: {}]   ;;  %s2827_s2 = inlined_call_operand.vmem [shape: f32[8,128], index: 2, kind: input, shape index: {}]   ;;  %s2828_s3 = inlined_call_operand.hbm [shape: f32[512,128], index: 3, kind: output, shape index: {}]  }
   0x1   :  { %v80_v0 = vld [vmem:[%s2826_s1 + $0x8] sm:$0xff]  ;;  %v79_v1 = vld [vmem:[%s2826_s1] sm:$0xff]  ;;  %v33_v2 = vld [vmem:[%s2825_s0 + $0x90] sm:$0xff] }
   0x2   :  { %1795 = vmatpush.msra.mxu1 %v80_v0  ;;  %290 = vmatpush.msra.mxu0 %v80_v0  ;;  %v15_v3 = vld [vmem:[%s2825_s0] sm:$0xff]  ;;  %v564_v4 = vld [vmem:[%s2826_s1 + $0x88] sm:$0xff]  ;;  %v562_v6 = vld [vmem:[%s2826_s1 + $0x78] sm:$0xff] }
   0x3   :  { %1796 = vmatpush.msra.mxu2 %v80_v0  ;;  %1797 = vmatpush.msra.mxu3 %v80_v0  ;;  %v563_v5 = vld [vmem:[%s2826_s1 + $0x80] sm:$0xff] }
   0x4   :  { %1798 = vmatpush.msra.mxu1 %v79_v1  ;;  %291 = vmatpush.msra.mxu0 %v79_v1 }
   0x5   :  { %1749 = vmatmul.msk.f32.vlgmr.msra.gmra.mxu1 %vm83_vm0, %v33_v2  ;;  %1731 = vmatmul.msk.f32.vlgmr.msra.gmra.mxu0 %vm83_vm0, %v15_v3 }
   0x6   :  { %567 = vmatpush.msrb.mxu1 %v564_v4  ;;  %1799 = vmatpush.msra.mxu2 %v79_v1 }
   0x7   :  { %1800 = vmatpush.msra.mxu3 %v79_v1 }
   0x8   :  { %568 = vmatpush.msrb.mxu1 %v563_v5 }
   0x9   :  { %8 = vsyncpa [#allocation3], 0  ;;  %v561_v7 = vld [vmem:[%s2826_s1 + $0x70] sm:$0xff]  ;;  %v34_v8 = vld [vmem:[%s2825_s0 + $0x98] sm:$0xff]  ;;  %s1719_s22 = sshll.u32 %s2828_s3, 4  ;;  %s1857_s23 = smov 128   ;;  %s1720_s22 = int_to_ptr.hbm [resolvable:$true] %s1719_s22 }
   0xa   :  { %v16_v9 = vld [vmem:[%s2825_s0 + $0x8] sm:$0xff]  ;;  %569 = vmatpush.msrb.mxu1 %v562_v6  ;;  %v559_v11 = vld [vmem:[%s2826_s1 + $0x60] sm:$0xff]  ;;  %v17_v13 = vld [vmem:[%s2825_s0 + $0x10] sm:$0xff]  ;;  %s1858_s24 = smov 8  }
   0xb   :  { %v560_v10 = vld [vmem:[%s2826_s1 + $0x68] sm:$0xff]  ;;  %v35_v12 = vld [vmem:[%s2825_s0 + $0xa0] sm:$0xff]  ;;  %v558_v14 = vld [vmem:[%s2826_s1 + $0x58] sm:$0xff] }
   0xc   :  { %570 = vmatpush.msrb.mxu1 %v561_v7  ;;  %v36_v15 = vld [vmem:[%s2825_s0 + $0xa8] sm:$0xff]  ;;  %v18_v16 = vld [vmem:[%s2825_s0 + $0x18] sm:$0xff]  ;;  %v557_v17 = vld [vmem:[%s2826_s1 + $0x50] sm:$0xff] }
   0xd   :  { %1750 = vmatmul.msk.f32.gmra.mxu1 %vm83_vm0, %v34_v8  ;;  %1732 = vmatmul.msk.f32.gmra.mxu0 %vm83_vm0, %v16_v9  ;;  %v37_v18 = vld [vmem:[%s2825_s0 + $0xb0] sm:$0xff]  ;;  %v19_v19 = vld [vmem:[%s2825_s0 + $0x20] sm:$0xff]  ;;  %v556_v20 = vld [vmem:[%s2826_s1 + $0x48] sm:$0xff] }
   0xe   :  { %571 = vmatpush.msrb.mxu1 %v560_v10  ;;  %v38_v21 = vld [vmem:[%s2825_s0 + $0xb8] sm:$0xff]  ;;  %v20_v22 = vld [vmem:[%s2825_s0 + $0x28] sm:$0xff]  ;;  %v555_v23 = vld [vmem:[%s2826_s1 + $0x40] sm:$0xff] }
   0xf   :  { %v39_v24 = vld [vmem:[%s2825_s0 + $0xc0] sm:$0xff]  ;;  %v21_v25 = vld [vmem:[%s2825_s0 + $0x30] sm:$0xff]  ;;  %v554_v26 = vld [vmem:[%s2826_s1 + $0x38] sm:$0xff] }
  0x10   :  { %572 = vmatpush.msrb.mxu1 %v559_v11  ;;  %v40_v27 = vld [vmem:[%s2825_s0 + $0xc8] sm:$0xff]  ;;  %v22_v28 = vld [vmem:[%s2825_s0 + $0x38] sm:$0xff]  ;;  %v553_v29 = vld [vmem:[%s2826_s1 + $0x30] sm:$0xff] }
  0x11   :  { %v41_v30 = vld [vmem:[%s2825_s0 + $0xd0] sm:$0xff]  ;;  %v23_v31 = vld [vmem:[%s2825_s0 + $0x40] sm:$0xff]  ;;  %v552_v32 = vld [vmem:[%s2826_s1 + $0x28] sm:$0xff] }
  0x12   :  { %573 = vmatpush.msrb.mxu1 %v558_v14  ;;  %v42_v33 = vld [vmem:[%s2825_s0 + $0xd8] sm:$0xff]  ;;  %v24_v34 = vld [vmem:[%s2825_s0 + $0x48] sm:$0xff]  ;;  %v551_v35 = vld [vmem:[%s2826_s1 + $0x20] sm:$0xff] }
  0x13   :  { %v43_v36 = vld [vmem:[%s2825_s0 + $0xe0] sm:$0xff]  ;;  %v25_v37 = vld [vmem:[%s2825_s0 + $0x50] sm:$0xff]  ;;  %v550_v38 = vld [vmem:[%s2826_s1 + $0x18] sm:$0xff] }
  0x14   :  { %574 = vmatpush.msrb.mxu1 %v557_v17  ;;  %v44_v39 = vld [vmem:[%s2825_s0 + $0xe8] sm:$0xff]  ;;  %v26_v40 = vld [vmem:[%s2825_s0 + $0x58] sm:$0xff]  ;;  %v45_v41 = vld [vmem:[%s2825_s0 + $0xf0] sm:$0xff] }
  0x15   :  { %1751 = vmatmul.msk.f32.gmra.mxu1 %vm83_vm0, %v35_v12  ;;  %1733 = vmatmul.msk.f32.gmra.mxu0 %vm83_vm0, %v17_v13  ;;  %v27_v42 = vld [vmem:[%s2825_s0 + $0x60] sm:$0xff]  ;;  %v549_v43 = vld [vmem:[%s2826_s1 + $0x10] sm:$0xff]  ;;  %v46_v44 = vld [vmem:[%s2825_s0 + $0xf8] sm:$0xff] }
  0x16   :  { %575 = vmatpush.msrb.mxu1 %v556_v20  ;;  %v28_v45 = vld [vmem:[%s2825_s0 + $0x68] sm:$0xff]  ;;  %v50_v46 = vld [vmem:[%s2825_s0 + $0x118] sm:$0xff]  ;;  %v47_v48 = vld [vmem:[%s2825_s0 + $0x100] sm:$0xff] }
  0x17   :  { %v855_v47 = vld [vmem:[%s2826_s1 + $0x108] sm:$0xff]  ;;  %1766 = vmatmul.msk.f32.vlgmr.msra.gmra.mxu2 %vm83_vm0, %v50_v46  ;;  %v29_v49 = vld [vmem:[%s2825_s0 + $0x70] sm:$0xff]  ;;  %v51_v50 = vld [vmem:[%s2825_s0 + $0x120] sm:$0xff] }
  0x18   :  { %576 = vmatpush.msrb.mxu1 %v555_v23  ;;  %858 = vmatpush.msrb.mxu2 %v855_v47  ;;  %v854_v51 = vld [vmem:[%s2826_s1 + $0x100] sm:$0xff]  ;;  %v48_v52 = vld [vmem:[%s2825_s0 + $0x108] sm:$0xff]  ;;  %v30_v53 = vld [vmem:[%s2825_s0 + $0x78] sm:$0xff] }
  0x19   :  { %v52_v54 = vld [vmem:[%s2825_s0 + $0x128] sm:$0xff]  ;;  %v853_v55 = vld [vmem:[%s2826_s1 + $0xf8] sm:$0xff]  ;;  %v49_v57 = vld [vmem:[%s2825_s0 + $0x110] sm:$0xff] }
  0x1a   :  { %577 = vmatpush.msrb.mxu1 %v554_v26  ;;  %859 = vmatpush.msrb.mxu2 %v854_v51  ;;  %v31_v59 = vld [vmem:[%s2825_s0 + $0x80] sm:$0xff]  ;;  %v53_v62 = vld [vmem:[%s2825_s0 + $0x130] sm:$0xff]  ;;  %v32_v3 = vld [vmem:[%s2825_s0 + $0x88] sm:$0xff] }
  0x1b   :  { %v2093_v60 = vld [vmem:[%s2827_s2] ss:$0 sm:$0xff]  ;;  %v852_v63 = vld [vmem:[%s2826_s1 + $0xf0] sm:$0xff]  ;;  %v54_v5 = vld [vmem:[%s2825_s0 + $0x138] sm:$0xff] }
  0x1c   :  { %578 = vmatpush.msrb.mxu1 %v553_v29  ;;  %860 = vmatpush.msrb.mxu2 %v853_v55  ;;  %v851_v6 = vld [vmem:[%s2826_s1 + $0xe8] sm:$0xff]  ;;  %v55_v11 = vld [vmem:[%s2825_s0 + $0x140] sm:$0xff]  ;;  %v57_v23 = vld [vmem:[%s2825_s0 + $0x150] sm:$0xff] }
  0x1d   :  { %1752 = vmatmul.msk.f32.gmra.mxu1 %vm83_vm0, %v36_v15  ;;  %1734 = vmatmul.msk.f32.gmra.mxu0 %vm83_vm0, %v18_v16  ;;  %v850_v12 = vld [vmem:[%s2826_s1 + $0xe0] sm:$0xff]  ;;  %v56_v17 = vld [vmem:[%s2825_s0 + $0x148] sm:$0xff]  ;;  %v58_v29 = vld [vmem:[%s2825_s0 + $0x158] sm:$0xff] }
  0x1e   :  { %579 = vmatpush.msrb.mxu1 %v552_v32  ;;  %861 = vmatpush.msrb.mxu2 %v852_v63  ;;  %v61_v47 = vld [vmem:[%s2825_s0 + $0x170] sm:$0xff] }
  0x1f   :  { %1767 = vmatmul.msk.f32.gmra.mxu2 %vm83_vm0, %v51_v50 }
  0x20   :  { %580 = vmatpush.msrb.mxu1 %v551_v35  ;;  %862 = vmatpush.msrb.mxu2 %v851_v6  ;;  %v59_v35 = vld [vmem:[%s2825_s0 + $0x160] sm:$0xff] }
  0x22   :  { %581 = vmatpush.msrb.mxu1 %v550_v38  ;;  %863 = vmatpush.msrb.mxu2 %v850_v12  ;;  %v840_v12 = vld [vmem:[%s2826_s1 + $0x90] sm:$0xff] }
  0x24   :  { %582 = vmatpush.msrb.mxu1 %v549_v43 }
  0x25   :  { %1753 = vmatmul.msk.f32.gmra.mxu1 %vm83_vm0, %v37_v18  ;;  %1735 = vmatmul.msk.f32.gmra.mxu0 %vm83_vm0, %v19_v19  ;;  %v849_v18 = vld [vmem:[%s2826_s1 + $0xd8] sm:$0xff] }
  0x26   :  { %864 = vmatpush.msrb.mxu2 %v849_v18 }
  0x27   :  { %1768 = vmatmul.msk.f32.gmra.mxu2 %vm83_vm0, %v52_v54  ;;  %v843_v54 = vld [vmem:[%s2826_s1 + $0xa8] sm:$0xff] }
  0x2d   :  { %1754 = vmatmul.msk.f32.gmra.mxu1 %vm83_vm0, %v38_v21  ;;  %1736 = vmatmul.msk.f32.gmra.mxu0 %vm83_vm0, %v20_v22 }
  0x2f   :  { %1769 = vmatmul.msk.f32.gmra.mxu2 %vm83_vm0, %v53_v62  ;;  %v842_v62 = vld [vmem:[%s2826_s1 + $0xa0] sm:$0xff] }
  0x35   :  { %1755 = vmatmul.msk.f32.gmra.mxu1 %vm83_vm0, %v39_v24  ;;  %1737 = vmatmul.msk.f32.gmra.mxu0 %vm83_vm0, %v21_v25  ;;  %v848_v24 = vld [vmem:[%s2826_s1 + $0xd0] sm:$0xff] }
  0x36   :  { %865 = vmatpush.msrb.mxu2 %v848_v24 }
  0x37   :  { %1770 = vmatmul.msk.f32.gmra.mxu2 %vm83_vm0, %v54_v5  ;;  %v841_v5 = vld [vmem:[%s2826_s1 + $0x98] sm:$0xff] }
  0x3d   :  { %1756 = vmatmul.msk.f32.gmra.mxu1 %vm83_vm0, %v40_v27  ;;  %1738 = vmatmul.msk.f32.gmra.mxu0 %vm83_vm0, %v22_v28 }
  0x3f   :  { %1771 = vmatmul.msk.f32.gmra.mxu2 %vm83_vm0, %v55_v11  ;;  %v65_v11 = vld [vmem:[%s2825_s0 + $0x190] sm:$0xff] }
  0x45   :  { %1757 = vmatmul.msk.f32.gmra.mxu1 %vm83_vm0, %v41_v30  ;;  %1739 = vmatmul.msk.f32.gmra.mxu0 %vm83_vm0, %v23_v31  ;;  %v847_v30 = vld [vmem:[%s2826_s1 + $0xc8] sm:$0xff] }
  0x46   :  { %866 = vmatpush.msrb.mxu2 %v847_v30 }
  0x47   :  { %1772 = vmatmul.msk.f32.gmra.mxu2 %vm83_vm0, %v56_v17 }
  0x4d   :  { %1758 = vmatmul.msk.f32.gmra.mxu1 %vm83_vm0, %v42_v33  ;;  %1740 = vmatmul.msk.f32.gmra.mxu0 %vm83_vm0, %v24_v34 }
  0x4f   :  { %1773 = vmatmul.msk.f32.gmra.mxu2 %vm83_vm0, %v57_v23 }
  0x55   :  { %1759 = vmatmul.msk.f32.gmra.mxu1 %vm83_vm0, %v43_v36  ;;  %1741 = vmatmul.msk.f32.gmra.mxu0 %vm83_vm0, %v25_v37  ;;  %v846_v36 = vld [vmem:[%s2826_s1 + $0xc0] sm:$0xff] }
  0x56   :  { %867 = vmatpush.msrb.mxu2 %v846_v36  ;;  %v2250_v36 = vld [vmem:[%s2827_s2 + $0x1] ss:$0 sm:$0xff] }
  0x57   :  { %1774 = vmatmul.msk.f32.gmra.mxu2 %vm83_vm0, %v58_v29 }
  0x5d   :  { %1760 = vmatmul.msk.f32.gmra.mxu1 %vm83_vm0, %v44_v39  ;;  %1742 = vmatmul.msk.f32.gmra.mxu0 %vm83_vm0, %v26_v40 }
  0x5f   :  { %1775 = vmatmul.msk.f32.gmra.mxu2 %vm83_vm0, %v59_v35 }
  0x65   :  { %1761 = vmatmul.msk.f32.gmra.mxu1 %vm83_vm0, %v45_v41  ;;  %1743 = vmatmul.msk.f32.gmra.mxu0 %vm83_vm0, %v27_v42  ;;  %v60_v41 = vld [vmem:[%s2825_s0 + $0x168] sm:$0xff]  ;;  %v845_v42 = vld [vmem:[%s2826_s1 + $0xb8] sm:$0xff] }
  0x66   :  { %868 = vmatpush.msrb.mxu2 %v845_v42 }
  0x67   :  { %1776 = vmatmul.msk.f32.gmra.mxu2 %vm83_vm0, %v60_v41 }
  0x6d   :  { %1762 = vmatmul.msk.f32.gmra.mxu1 %vm83_vm0, %v46_v44  ;;  %1744 = vmatmul.msk.f32.gmra.mxu0 %vm83_vm0, %v28_v45 }
  0x6f   :  { %1777 = vmatmul.msk.f32.gmra.mxu2 %vm83_vm0, %v61_v47 }
  0x75   :  { %1763 = vmatmul.msk.f32.gmra.mxu1 %vm83_vm0, %v47_v48  ;;  %1745 = vmatmul.msk.f32.gmra.mxu0 %vm83_vm0, %v29_v49  ;;  %v844_v48 = vld [vmem:[%s2826_s1 + $0xb0] sm:$0xff] }
  0x76   :  { %869 = vmatpush.msrb.mxu2 %v844_v48 }
  0x78   :  { %870 = vmatpush.msrb.mxu2 %v843_v54  ;;  %v67_v54 = vld [vmem:[%s2825_s0 + $0x1a0] sm:$0xff] }
  0x7a   :  { %871 = vmatpush.msrb.mxu2 %v842_v62 }
  0x7c   :  { %872 = vmatpush.msrb.mxu2 %v841_v5 }
  0x7d   :  { %1764 = vmatmul.msk.f32.gmra.mxu1 %vm83_vm0, %v48_v52  ;;  %1746 = vmatmul.msk.f32.gmra.mxu0 %vm83_vm0, %v30_v53  ;;  %v62_v53 = vld [vmem:[%s2825_s0 + $0x178] sm:$0xff] }
  0x7e   :  { %1778 = vmatmul.msk.f32.gmra.mxu2 %vm83_vm0, %v62_v53  ;;  %v1145_v53 = vld [vmem:[%s2826_s1 + $0x180] sm:$0xff] }
  0x7f   :  { %873 = vmatpush.msrb.mxu2 %v840_v12 }
  0x82   :  { %v2082_v56 = vpop.f32.mrf.mxu1  ;;  %v293_v58 = vpop.f32.mrf.mxu0 }
  0x83   :  { %v294_v61 = vadd.f32 %v2093_v60, %v293_v58 }
  0x85   :  { %1765 = vmatmul.msk.f32.gmra.mxu1 %vm83_vm0, %v49_v57  ;;  %1747 = vmatmul.msk.f32.gmra.mxu0 %vm83_vm0, %v31_v59  ;;  %v485_v0 = vmax.f32 %v294_v61, 0.0  ;;  %v63_v61 = vld [vmem:[%s2825_s0 + $0x180] sm:$0xff] }
  0x86   :  { %1779 = vmatmul.msk.f32.gmra.mxu2 %vm83_vm0, %v63_v61 }
  0x8a   :  { %v2105_v1 = vpop.f32.mrf.mxu1  ;;  %v296_v2 = vpop.f32.mrf.mxu0 }
  0x8b   :  { %v297_v4 = vadd.f32 %v2093_v60, %v296_v2 }
  0x8d   :  { %583 = vmatmul.f32.vlgmr.msrb.gmra.mxu1 %v485_v0  ;;  %1748 = vmatmul.msk.f32.gmra.mxu0 %vm83_vm0, %v32_v3  ;;  %v486_v7 = vmax.f32 %v297_v4, 0.0  ;;  %v64_v4 = vld [vmem:[%s2825_s0 + $0x188] sm:$0xff] }
  0x8e   :  { %1780 = vmatmul.msk.f32.gmra.mxu2 %vm83_vm0, %v64_v4 }
  0x92   :  { %v2119_v8 = vpop.f32.mrf.mxu1  ;;  %v299_v9 = vpop.f32.mrf.mxu0 }
  0x93   :  { %v300_v10 = vadd.f32 %v2093_v60, %v299_v9  ;;  %v354_v12 = vadd.f32 %v2093_v60, %v2119_v8 }
  0x95   :  { %586 = vmatmul.f32.gmra.mxu1 %v486_v7  ;;  %v487_v13 = vmax.f32 %v300_v10, 0.0 }
  0x96   :  { %1781 = vmatmul.msk.f32.gmra.mxu2 %vm83_vm0, %v65_v11 }
  0x9a   :  { %v2129_v14 = vpop.f32.mrf.mxu1  ;;  %v302_v15 = vpop.f32.mrf.mxu0 }
  0x9b   :  { %v303_v16 = vadd.f32 %v2093_v60, %v302_v15  ;;  %v357_v8 = vadd.f32 %v2093_v60, %v2129_v14  ;;  %v71_v14 = vld [vmem:[%s2825_s0 + $0x1c0] sm:$0xff] }
  0x9d   :  { %589 = vmatmul.f32.gmra.mxu1 %v487_v13  ;;  %v488_v19 = vmax.f32 %v303_v16, 0.0 }
  0xa2   :  { %v2139_v20 = vpop.f32.mrf.mxu1  ;;  %v305_v21 = vpop.f32.mrf.mxu0 }
  0xa3   :  { %v306_v22 = vadd.f32 %v2093_v60, %v305_v21 }
  0xa5   :  { %592 = vmatmul.f32.gmra.mxu1 %v488_v19  ;;  %v489_v25 = vmax.f32 %v306_v22, 0.0  ;;  %v2232_v19 = vpop.f32.mrf.mxu2 }
  0xaa   :  { %v2149_v26 = vpop.f32.mrf.mxu1  ;;  %v308_v27 = vpop.f32.mrf.mxu0 }
  0xab   :  { %v309_v28 = vadd.f32 %v2093_v60, %v308_v27 }
  0xad   :  { %595 = vmatmul.f32.gmra.mxu1 %v489_v25  ;;  %v490_v31 = vmax.f32 %v309_v28, 0.0  ;;  %v2239_v28 = vpop.f32.mrf.mxu2 }
  0xb2   :  { %v2159_v32 = vpop.f32.mrf.mxu1  ;;  %v311_v33 = vpop.f32.mrf.mxu0 }
  0xb3   :  { %v312_v34 = vadd.f32 %v2093_v60, %v311_v33 }
  0xb5   :  { %598 = vmatmul.f32.gmra.mxu1 %v490_v31  ;;  %v491_v37 = vmax.f32 %v312_v34, 0.0  ;;  %v2245_v35 = vpop.f32.mrf.mxu2 }
  0xba   :  { %v2169_v38 = vpop.f32.mrf.mxu1  ;;  %v314_v39 = vpop.f32.mrf.mxu0 }
  0xbb   :  { %v315_v40 = vadd.f32 %v2093_v60, %v314_v39 }
  0xbd   :  { %601 = vmatmul.f32.gmra.mxu1 %v491_v37  ;;  %v492_v43 = vmax.f32 %v315_v40, 0.0  ;;  %v2261_v47 = vpop.f32.mrf.mxu2 }
  0xc2   :  { %v2179_v44 = vpop.f32.mrf.mxu1  ;;  %v317_v45 = vpop.f32.mrf.mxu0 }
  0xc3   :  { %v318_v46 = vadd.f32 %v2093_v60, %v317_v45  ;;  %v66_v45 = vld [vmem:[%s2825_s0 + $0x198] sm:$0xff] }
  0xc4   :  { %1782 = vmatmul.msk.f32.vlgmr.msra.gmra.mxu3 %vm83_vm0, %v66_v45 }
  0xc5   :  { %604 = vmatmul.f32.gmra.mxu1 %v492_v43  ;;  %v493_v49 = vmax.f32 %v318_v46, 0.0  ;;  %v1146_v46 = vld [vmem:[%s2826_s1 + $0x188] sm:$0xff] }
  0xc6   :  { %1149 = vmatpush.msrb.mxu3 %v1146_v46  ;;  %v1139_v46 = vld [vmem:[%s2826_s1 + $0x150] sm:$0xff] }
  0xc8   :  { %1150 = vmatpush.msrb.mxu3 %v1145_v53 }
  0xca   :  { %v2189_v50 = vpop.f32.mrf.mxu1  ;;  %v320_v51 = vpop.f32.mrf.mxu0 }
  0xcb   :  { %v321_v52 = vadd.f32 %v2093_v60, %v320_v51 }
  0xcc   :  { %1783 = vmatmul.msk.f32.gmra.mxu3 %vm83_vm0, %v67_v54 }
  0xcd   :  { %607 = vmatmul.f32.gmra.mxu1 %v493_v49  ;;  %v494_v55 = vmax.f32 %v321_v52, 0.0 }
  0xd2   :  { %v2199_v57 = vpop.f32.mrf.mxu1  ;;  %v323_v58 = vpop.f32.mrf.mxu0 }
  0xd3   :  { %v324_v59 = vadd.f32 %v2093_v60, %v323_v58 }
  0xd5   :  { %610 = vmatmul.f32.gmra.mxu1 %v494_v55  ;;  %v495_v63 = vmax.f32 %v324_v59, 0.0  ;;  %v348_v55 = vadd.f32 %v2093_v60, %v2082_v56  ;;  %v2273_v59 = vpop.f32.mrf.mxu2  ;;  %v68_v56 = vld [vmem:[%s2825_s0 + $0x1a8] sm:$0xff] }
  0xd6   :  { %1784 = vmatmul.msk.f32.gmra.mxu3 %vm83_vm0, %v68_v56 }
  0xd7   :  { %v503_v61 = vmax.f32 %v348_v55, 0.0  ;;  %v1138_v55 = vld [vmem:[%s2826_s1 + $0x148] sm:$0xff] }
  0xda   :  { %v2209_v0 = vpop.f32.mrf.mxu1  ;;  %v326_v2 = vpop.f32.mrf.mxu0 }
  0xdb   :  { %v327_v3 = vadd.f32 %v2093_v60, %v326_v2 }
  0xdd   :  { %613 = vmatmul.f32.gmra.mxu1 %v495_v63  ;;  %v496_v6 = vmax.f32 %v327_v3, 0.0  ;;  %v1144_v63 = vld [vmem:[%s2826_s1 + $0x178] sm:$0xff]  ;;  %v351_v3 = vadd.f32 %v2093_v60, %v2105_v1  ;;  %v69_v1 = vld [vmem:[%s2825_s0 + $0x1b0] sm:$0xff] }
  0xde   :  { %1151 = vmatpush.msrb.mxu3 %v1144_v63 }
  0xdf   :  { %v504_v5 = vmax.f32 %v351_v3, 0.0  ;;  %1785 = vmatmul.msk.f32.gmra.mxu3 %vm83_vm0, %v69_v1  ;;  %v1137_v3 = vld [vmem:[%s2826_s1 + $0x140] sm:$0xff] }
  0xe2   :  { %v2219_v7 = vpop.f32.mrf.mxu1  ;;  %v329_v9 = vpop.f32.mrf.mxu0 }
  0xe3   :  { %v330_v10 = vadd.f32 %v2093_v60, %v329_v9  ;;  %v1143_v9 = vld [vmem:[%s2826_s1 + $0x170] sm:$0xff] }
  0xe4   :  { %1152 = vmatpush.msrb.mxu3 %v1143_v9 }
  0xe5   :  { %616 = vmatmul.f32.gmra.mxu1 %v496_v6  ;;  %v497_v13 = vmax.f32 %v330_v10, 0.0  ;;  %v2289_v10 = vpop.f32.mrf.mxu2 }
  0xea   :  { %v2229_v15 = vpop.f32.mrf.mxu1  ;;  %v332_v16 = vpop.f32.mrf.mxu0 }
  0xeb   :  { %v333_v17 = vadd.f32 %v2093_v60, %v332_v16 }
  0xed   :  { %619 = vmatmul.f32.gmra.mxu1 %v497_v13  ;;  %v498_v18 = vmax.f32 %v333_v17, 0.0  ;;  %v1142_v13 = vld [vmem:[%s2826_s1 + $0x168] sm:$0xff]  ;;  %v505_v17 = vmax.f32 %v354_v12, 0.0  ;;  %v75_v12 = vld [vmem:[%s2825_s0 + $0x1e0] sm:$0xff] }
  0xee   :  { %1153 = vmatpush.msrb.mxu3 %v1142_v13 }
  0xf2   :  { %v2234_v21 = vpop.f32.mrf.mxu1  ;;  %v335_v22 = vpop.f32.mrf.mxu0 }
  0xf3   :  { %v336_v23 = vadd.f32 %v2093_v60, %v335_v22 }
  0xf5   :  { %622 = vmatmul.f32.gmra.mxu1 %v498_v18  ;;  %v499_v24 = vmax.f32 %v336_v23, 0.0  ;;  %v70_v23 = vld [vmem:[%s2825_s0 + $0x1b8] sm:$0xff] }
  0xf6   :  { %1786 = vmatmul.msk.f32.gmra.mxu3 %vm83_vm0, %v70_v23 }
  0xfa   :  { %v2237_v25 = vpop.f32.mrf.mxu1  ;;  %v338_v27 = vpop.f32.mrf.mxu0 }
  0xfb   :  { %v339_v29 = vadd.f32 %v2093_v60, %v338_v27  ;;  %v1141_v27 = vld [vmem:[%s2826_s1 + $0x160] sm:$0xff] }
  0xfc   :  { %1154 = vmatpush.msrb.mxu3 %v1141_v27  ;;  %v375_v27 = vadd.f32 %v2093_v60, %v2189_v50  ;;  %v378_v50 = vadd.f32 %v2093_v60, %v2199_v57  ;;  %v381_v57 = vadd.f32 %v2093_v60, %v2209_v0 }
  0xfd   :  { %625 = vmatmul.f32.gmra.mxu1 %v499_v24  ;;  %v500_v30 = vmax.f32 %v339_v29, 0.0  ;;  %v2304_v24 = vpop.f32.mrf.mxu2 }
  0xfe   :  { %1787 = vmatmul.msk.f32.gmra.mxu3 %vm83_vm0, %v71_v14  ;;  %v1133_v14 = vld [vmem:[%s2826_s1 + $0x120] sm:$0xff] }
 0x102   :  { %v2242_v31 = vpop.f32.mrf.mxu1  ;;  %v341_v33 = vpop.f32.mrf.mxu0 }
 0x103   :  { %v342_v34 = vadd.f32 %v2093_v60, %v341_v33 }
 0x105   :  { %628 = vmatmul.f32.gmra.mxu1 %v500_v30  ;;  %v501_v37 = vmax.f32 %v342_v34, 0.0  ;;  %v506_v30 = vmax.f32 %v357_v8, 0.0  ;;  %v1134_v8 = vld [vmem:[%s2826_s1 + $0x128] sm:$0xff] }
 0x10a   :  { %v584_v39 = vpop.f32.mrf.mxu1  ;;  %v344_v40 = vpop.f32.mrf.mxu0 }
 0x10b   :  { %v585_v41 = vadd.f32 %v2250_v36, %v584_v39  ;;  %v345_v43 = vadd.f32 %v2093_v60, %v344_v40  ;;  %v360_v39 = vadd.f32 %v2093_v60, %v2139_v20  ;;  %v2322_v40 = vpop.f32.mrf.mxu2  ;;  %v363_v20 = vadd.f32 %v2093_v60, %v2149_v26 }
 0x10c   :  { %v366_v26 = vadd.f32 %v2093_v60, %v2159_v32  ;;  %v369_v32 = vadd.f32 %v2093_v60, %v2169_v38  ;;  %v372_v38 = vadd.f32 %v2093_v60, %v2179_v44  ;;  %v76_v44 = vld [vmem:[%s2825_s0 + $0x1e8] sm:$0xff] }
 0x10d   :  { %v776_v42 = vmax.f32 %v585_v41, 0.0  ;;  %631 = vmatmul.f32.gmra.mxu1 %v501_v37  ;;  %v502_v48 = vmax.f32 %v345_v43, 0.0  ;;  %v1140_v37 = vld [vmem:[%s2826_s1 + $0x158] sm:$0xff] }
 0x10e   :  { %1155 = vmatpush.msrb.mxu3 %v1140_v37  ;;  %v510_v9 = vmax.f32 %v369_v32, 0.0 }
 0x10f   :  { %874 = vmatmul.f32.vlgmr.msrb.gmra.mxu2 %v776_v42  ;;  %v507_v42 = vmax.f32 %v360_v39, 0.0  ;;  %v77_v39 = vld [vmem:[%s2825_s0 + $0x1f0] sm:$0xff] }
 0x110   :  { %1156 = vmatpush.msrb.mxu3 %v1139_v46 }
 0x112   :  { %v587_v49 = vpop.f32.mrf.mxu1  ;;  %1157 = vmatpush.msrb.mxu3 %v1138_v55 }
 0x113   :  { %v588_v51 = vadd.f32 %v2250_v36, %v587_v49 }
 0x114   :  { %1158 = vmatpush.msrb.mxu3 %v1137_v3  ;;  %v387_v3 = vadd.f32 %v2093_v60, %v2229_v15 }
 0x115   :  { %634 = vmatmul.f32.gmra.mxu1 %v502_v48  ;;  %v777_v52 = vmax.f32 %v588_v51, 0.0  ;;  %v72_v48 = vld [vmem:[%s2825_s0 + $0x1c8] sm:$0xff]  ;;  %v2334_v51 = vpop.f32.mrf.mxu2 }
 0x116   :  { %1788 = vmatmul.msk.f32.gmra.mxu3 %vm83_vm0, %v72_v48  ;;  %v1132_v48 = vld [vmem:[%s2826_s1 + $0x118] sm:$0xff]  ;;  %v516_v32 = vmax.f32 %v387_v3, 0.0 }
 0x117   :  { %877 = vmatmul.f32.gmra.mxu2 %v777_v52  ;;  %v508_v52 = vmax.f32 %v363_v20, 0.0  ;;  %v78_v20 = vld [vmem:[%s2825_s0 + $0x1f8] sm:$0xff] }
 0x11a   :  { %v590_v58 = vpop.f32.mrf.mxu1 }
 0x11b   :  { %v591_v62 = vadd.f32 %v2250_v36, %v590_v58  ;;  %v73_v58 = vld [vmem:[%s2825_s0 + $0x1d0] sm:$0xff] }
 0x11d   :  { %637 = vmatmul.f32.gmra.mxu1 %v503_v61  ;;  %v778_v2 = vmax.f32 %v591_v62, 0.0  ;;  %v509_v62 = vmax.f32 %v366_v26, 0.0  ;;  %v384_v26 = vadd.f32 %v2093_v60, %v2219_v7  ;;  %v1437_v7 = vld [vmem:[%s2826_s1 + $0x208] sm:$0xff] }
 0x11e   :  { %1789 = vmatmul.msk.f32.gmra.mxu3 %vm83_vm0, %v73_v58  ;;  %1440 = vmatpush.msrb.mxu0 %v1437_v7 }
 0x11f   :  { %880 = vmatmul.f32.gmra.mxu2 %v778_v2  ;;  %v2347_v2 = vpop.f32.mrf.mxu2 }
 0x122   :  { %v593_v4 = vpop.f32.mrf.mxu1 }
 0x123   :  { %v594_v6 = vadd.f32 %v2250_v36, %v593_v4  ;;  %v74_v4 = vld [vmem:[%s2825_s0 + $0x1d8] sm:$0xff] }
 0x125   :  { %640 = vmatmul.f32.gmra.mxu1 %v504_v5  ;;  %v779_v11 = vmax.f32 %v594_v6, 0.0  ;;  %v1136_v5 = vld [vmem:[%s2826_s1 + $0x138] sm:$0xff] }
 0x126   :  { %1790 = vmatmul.msk.f32.gmra.mxu3 %vm83_vm0, %v74_v4 }
 0x127   :  { %883 = vmatmul.f32.gmra.mxu2 %v779_v11  ;;  %1159 = vmatpush.msrb.mxu3 %v1136_v5  ;;  %v2365_v13 = vpop.f32.mrf.mxu2 }
 0x12a   :  { %v596_v16 = vpop.f32.mrf.mxu1 }
 0x12b   :  { %v597_v18 = vadd.f32 %v2250_v36, %v596_v16  ;;  %v1135_v16 = vld [vmem:[%s2826_s1 + $0x130] sm:$0xff] }
 0x12c   :  { %1160 = vmatpush.msrb.mxu3 %v1135_v16  ;;  %v1436_v16 = vld [vmem:[%s2826_s1 + $0x200] sm:$0xff] }
 0x12d   :  { %643 = vmatmul.f32.gmra.mxu1 %v505_v17  ;;  %v780_v22 = vmax.f32 %v597_v18, 0.0  ;;  %v511_v18 = vmax.f32 %v372_v38, 0.0  ;;  %1441 = vmatpush.msrb.mxu0 %v1436_v16 }
 0x12e   :  { %1791 = vmatmul.msk.f32.gmra.mxu3 %vm83_vm0, %v75_v12 }
 0x12f   :  { %886 = vmatmul.f32.gmra.mxu2 %v780_v22  ;;  %1161 = vmatpush.msrb.mxu3 %v1134_v8 }
 0x131   :  { %1162 = vmatpush.msrb.mxu3 %v1133_v14 }
 0x132   :  { %v599_v29 = vpop.f32.mrf.mxu1 }
 0x133   :  { %v600_v33 = vadd.f32 %v2250_v36, %v599_v29  ;;  %v2383_v29 = vpop.f32.mrf.mxu2  ;;  %1163 = vmatpush.msrb.mxu3 %v1132_v48 }
 0x135   :  { %646 = vmatmul.f32.gmra.mxu1 %v506_v30  ;;  %v781_v34 = vmax.f32 %v600_v33, 0.0  ;;  %v512_v33 = vmax.f32 %v375_v27, 0.0 }
 0x136   :  { %1792 = vmatmul.msk.f32.gmra.mxu3 %vm83_vm0, %v76_v44 }
 0x137   :  { %889 = vmatmul.f32.gmra.mxu2 %v781_v34 }
 0x13a   :  { %v602_v41 = vpop.f32.mrf.mxu1 }
 0x13b   :  { %v603_v43 = vadd.f32 %v2250_v36, %v602_v41 }
 0x13d   :  { %649 = vmatmul.f32.gmra.mxu1 %v507_v42  ;;  %v782_v45 = vmax.f32 %v603_v43, 0.0  ;;  %v2395_v42 = vpop.f32.mrf.mxu2  ;;  %v513_v43 = vmax.f32 %v378_v50, 0.0 }
 0x13e   :  { %1793 = vmatmul.msk.f32.gmra.mxu3 %vm83_vm0, %v77_v39 }
 0x13f   :  { %892 = vmatmul.f32.gmra.mxu2 %v782_v45 }
 0x142   :  { %v605_v49 = vpop.f32.mrf.mxu1 }
 0x143   :  { %v606_v53 = vadd.f32 %v2250_v36, %v605_v49  ;;  %v1131_v49 = vld [vmem:[%s2826_s1 + $0x110] sm:$0xff] }
 0x144   :  { %1164 = vmatpush.msrb.mxu3 %v1131_v49 }
 0x145   :  { %652 = vmatmul.f32.gmra.mxu1 %v508_v52  ;;  %v783_v54 = vmax.f32 %v606_v53, 0.0  ;;  %v514_v53 = vmax.f32 %v381_v57, 0.0  ;;  %v2411_v55 = vpop.f32.mrf.mxu2 }
 0x146   :  { %1794 = vmatmul.msk.f32.gmra.mxu3 %vm83_vm0, %v78_v20 }
 0x147   :  { %895 = vmatmul.f32.gmra.mxu2 %v783_v54  ;;  %1801 = vmatpush.msra.mxu3 %v1437_v7 }
 0x149   :  { %1802 = vmatpush.msra.mxu3 %v1436_v16  ;;  %v1432_v16 = vld [vmem:[%s2826_s1 + $0x1e0] sm:$0xff] }
 0x14a   :  { %v608_v61 = vpop.f32.mrf.mxu1 }
 0x14b   :  { %v609_v63 = vadd.f32 %v2250_v36, %v608_v61  ;;  %v515_v61 = vmax.f32 %v384_v26, 0.0  ;;  %v1433_v26 = vld [vmem:[%s2826_s1 + $0x1e8] sm:$0xff] }
 0x14d   :  { %v784_v56 = vmax.f32 %v609_v63, 0.0  ;;  %655 = vmatmul.f32.gmra.mxu1 %v509_v62 }
 0x14f   :  { %898 = vmatmul.f32.gmra.mxu2 %v784_v56  ;;  %v2416_v56 = vpop.f32.mrf.mxu2 }
 0x152   :  { %v611_v6 = vpop.f32.mrf.mxu1 }
 0x153   :  { %v612_v11 = vadd.f32 %v2250_v36, %v611_v6 }
 0x155   :  { %v785_v1 = vmax.f32 %v612_v11, 0.0  ;;  %658 = vmatmul.f32.gmra.mxu1 %v510_v9  ;;  %v390_v9 = vadd.f32 %v2093_v60, %v2234_v21  ;;  %v2437_v21 = vld [vmem:[%s2827_s2 + $0x2] ss:$0 sm:$0xff] }
 0x157   :  { %901 = vmatmul.f32.gmra.mxu2 %v785_v1  ;;  %v2426_v11 = vpop.f32.mrf.mxu2  ;;  %v517_v1 = vmax.f32 %v390_v9, 0.0 }
 0x15a   :  { %v614_v17 = vpop.f32.mrf.mxu1 }
 0x15b   :  { %v615_v22 = vadd.f32 %v2250_v36, %v614_v17  ;;  %v393_v17 = vadd.f32 %v2093_v60, %v2237_v25  ;;  %v1435_v25 = vld [vmem:[%s2826_s1 + $0x1f8] sm:$0xff] }
 0x15c   :  { %1442 = vmatpush.msrb.mxu0 %v1435_v25  ;;  %1803 = vmatpush.msra.mxu3 %v1435_v25 }
 0x15d   :  { %v786_v23 = vmax.f32 %v615_v22, 0.0  ;;  %661 = vmatmul.f32.gmra.mxu1 %v511_v18 }
 0x15f   :  { %904 = vmatmul.f32.gmra.mxu2 %v786_v23  ;;  %v518_v23 = vmax.f32 %v393_v17, 0.0 }
 0x162   :  { %v617_v30 = vpop.f32.mrf.mxu1 }
 0x163   :  { %v618_v34 = vadd.f32 %v2250_v36, %v617_v30 }
 0x165   :  { %v787_v37 = vmax.f32 %v618_v34, 0.0  ;;  %664 = vmatmul.f32.gmra.mxu1 %v512_v33  ;;  %v396_v33 = vadd.f32 %v2093_v60, %v2242_v31  ;;  %v2446_v34 = vpop.f32.mrf.mxu3 }
 0x167   :  { %907 = vmatmul.f32.gmra.mxu2 %v787_v37  ;;  %v519_v39 = vmax.f32 %v396_v33, 0.0  ;;  %v1431_v33 = vld [vmem:[%s2826_s1 + $0x1d8] sm:$0xff] }
 0x16a   :  { %v620_v41 = vpop.f32.mrf.mxu1 }
 0x16b   :  { %v621_v45 = vadd.f32 %v2250_v36, %v620_v41 }
 0x16d   :  { %v788_v46 = vmax.f32 %v621_v45, 0.0  ;;  %667 = vmatmul.f32.gmra.mxu1 %v513_v43  ;;  %v399_v45 = vadd.f32 %v2093_v60, %v2232_v19 }
 0x16f   :  { %910 = vmatmul.f32.gmra.mxu2 %v788_v46  ;;  %v1434_v46 = vld [vmem:[%s2826_s1 + $0x1f0] sm:$0xff]  ;;  %v520_v57 = vmax.f32 %v399_v45, 0.0 }
 0x170   :  { %1443 = vmatpush.msrb.mxu0 %v1434_v46  ;;  %1804 = vmatpush.msra.mxu3 %v1434_v46  ;;  %v1430_v45 = vld [vmem:[%s2826_s1 + $0x1d0] sm:$0xff] }
 0x172   :  { %v623_v52 = vpop.f32.mrf.mxu1  ;;  %1444 = vmatpush.msrb.mxu0 %v1433_v26  ;;  %1805 = vmatpush.msra.mxu3 %v1433_v26 }
 0x173   :  { %v624_v54 = vadd.f32 %v2250_v36, %v623_v52 }
 0x174   :  { %1445 = vmatpush.msrb.mxu0 %v1432_v16  ;;  %1806 = vmatpush.msra.mxu3 %v1432_v16  ;;  %v423_v16 = vadd.f32 %v2093_v60, %v2334_v51 }
 0x175   :  { %v789_v58 = vmax.f32 %v624_v54, 0.0  ;;  %670 = vmatmul.f32.gmra.mxu1 %v514_v53  ;;  %v2457_v53 = vpop.f32.mrf.mxu3 }
 0x176   :  { %1446 = vmatpush.msrb.mxu0 %v1431_v33  ;;  %1807 = vmatpush.msra.mxu3 %v1431_v33  ;;  %v1426_v33 = vld [vmem:[%s2826_s1 + $0x1b0] sm:$0xff] }
 0x177   :  { %913 = vmatmul.f32.gmra.mxu2 %v789_v58  ;;  %v402_v58 = vadd.f32 %v2093_v60, %v2239_v28  ;;  %v405_v28 = vadd.f32 %v2093_v60, %v2245_v35  ;;  %v408_v35 = vadd.f32 %v2093_v60, %v2261_v47  ;;  %v411_v47 = vadd.f32 %v2093_v60, %v2273_v59 }
 0x178   :  { %1447 = vmatpush.msrb.mxu0 %v1430_v45  ;;  %1808 = vmatpush.msra.mxu3 %v1430_v45  ;;  %v414_v59 = vadd.f32 %v2093_v60, %v2289_v10  ;;  %v417_v10 = vadd.f32 %v2093_v60, %v2304_v24  ;;  %v420_v24 = vadd.f32 %v2093_v60, %v2322_v40  ;;  %v1427_v40 = vld [vmem:[%s2826_s1 + $0x1b8] sm:$0xff]  ;;  %v1425_v45 = vld [vmem:[%s2826_s1 + $0x1a8] sm:$0xff] }
 0x179   :  { %v522_v9 = vmax.f32 %v405_v28, 0.0  ;;  %v1428_v28 = vld [vmem:[%s2826_s1 + $0x1c0] sm:$0xff] }
 0x17a   :  { %v626_v0 = vpop.f32.mrf.mxu1 }
 0x17b   :  { %v627_v62 = vadd.f32 %v2250_v36, %v626_v0 }
 0x17d   :  { %v790_v63 = vmax.f32 %v627_v62, 0.0  ;;  %673 = vmatmul.f32.gmra.mxu1 %v515_v61  ;;  %v521_v62 = vmax.f32 %v402_v58, 0.0  ;;  %v1429_v58 = vld [vmem:[%s2826_s1 + $0x1c8] sm:$0xff] }
 0x17e   :  { %1448 = vmatpush.msrb.mxu0 %v1429_v58  ;;  %1809 = vmatpush.msra.mxu3 %v1429_v58 }
 0x17f   :  { %916 = vmatmul.f32.gmra.mxu2 %v790_v63 }
 0x180   :  { %1449 = vmatpush.msrb.mxu0 %v1428_v28  ;;  %1810 = vmatpush.msra.mxu3 %v1428_v28  ;;  %v1422_v28 = vld [vmem:[%s2826_s1 + $0x190] sm:$0xff] }
 0x182   :  { %v629_v4 = vpop.f32.mrf.mxu1  ;;  %1450 = vmatpush.msrb.mxu0 %v1427_v40  ;;  %1811 = vmatpush.msra.mxu3 %v1427_v40 }
 0x183   :  { %v630_v5 = vadd.f32 %v2250_v36, %v629_v4 }
 0x184   :  { %1451 = vmatpush.msrb.mxu0 %v1426_v33  ;;  %1812 = vmatpush.msra.mxu3 %v1426_v33 }
 0x185   :  { %v791_v6 = vmax.f32 %v630_v5, 0.0  ;;  %676 = vmatmul.f32.gmra.mxu1 %v516_v32  ;;  %v2466_v5 = vpop.f32.mrf.mxu3 }
 0x186   :  { %1452 = vmatpush.msrb.mxu0 %v1425_v45  ;;  %1813 = vmatpush.msra.mxu3 %v1425_v45 }
 0x187   :  { %919 = vmatmul.f32.gmra.mxu2 %v791_v6 }
 0x18a   :  { %v632_v15 = vpop.f32.mrf.mxu1 }
 0x18b   :  { %v633_v12 = vadd.f32 %v2250_v36, %v632_v15 }
 0x18d   :  { %v792_v38 = vmax.f32 %v633_v12, 0.0  ;;  %679 = vmatmul.f32.gmra.mxu1 %v517_v1  ;;  %v2477_v17 = vpop.f32.mrf.mxu3 }
 0x18f   :  { %922 = vmatmul.f32.gmra.mxu2 %v792_v38 }
 0x192   :  { %v635_v18 = vpop.f32.mrf.mxu1  ;;  %v875_v22 = vpop.f32.mrf.mxu2 }
 0x193   :  { %v636_v8 = vadd.f32 %v2250_v36, %v635_v18  ;;  %v876_v44 = vadd.f32 %v2437_v21, %v875_v22 }
 0x195   :  { %v793_v27 = vmax.f32 %v636_v8, 0.0  ;;  %v1067_v30 = vmax.f32 %v876_v44, 0.0  ;;  %682 = vmatmul.f32.gmra.mxu1 %v518_v23  ;;  %v523_v23 = vmax.f32 %v408_v35, 0.0  ;;  %v2486_v25 = vpop.f32.mrf.mxu3 }
 0x197   :  { %925 = vmatmul.f32.gmra.mxu2 %v793_v27  ;;  %1165 = vmatmul.f32.vlgmr.msrb.gmra.mxu3 %v1067_v30 }
 0x19a   :  { %v638_v37 = vpop.f32.mrf.mxu1  ;;  %v878_v14 = vpop.f32.mrf.mxu2 }
 0x19b   :  { %v639_v50 = vadd.f32 %v2250_v36, %v638_v37  ;;  %v879_v41 = vadd.f32 %v2437_v21, %v878_v14 }
 0x19d   :  { %v794_v43 = vmax.f32 %v639_v50, 0.0  ;;  %685 = vmatmul.f32.gmra.mxu1 %v519_v39  ;;  %v1068_v31 = vmax.f32 %v879_v41, 0.0  ;;  %v524_v39 = vmax.f32 %v411_v47, 0.0 }
 0x19f   :  { %928 = vmatmul.f32.gmra.mxu2 %v794_v43  ;;  %1168 = vmatmul.f32.gmra.mxu3 %v1068_v31 }
 0x1a2   :  { %v641_v48 = vpop.f32.mrf.mxu1  ;;  %v881_v20 = vpop.f32.mrf.mxu2 }
 0x1a3   :  { %v642_v49 = vadd.f32 %v2250_v36, %v641_v48  ;;  %v882_v52 = vadd.f32 %v2437_v21, %v881_v20  ;;  %v525_v20 = vmax.f32 %v414_v59, 0.0 }
 0x1a5   :  { %v795_v54 = vmax.f32 %v642_v49, 0.0  ;;  %688 = vmatmul.f32.gmra.mxu1 %v520_v57  ;;  %v1069_v19 = vmax.f32 %v882_v52, 0.0  ;;  %v2497_v52 = vpop.f32.mrf.mxu3 }
 0x1a7   :  { %931 = vmatmul.f32.gmra.mxu2 %v795_v54  ;;  %1171 = vmatmul.f32.gmra.mxu3 %v1069_v19 }
 0x1aa   :  { %v644_v0 = vpop.f32.mrf.mxu1  ;;  %v884_v61 = vpop.f32.mrf.mxu2 }
 0x1ab   :  { %v645_v63 = vadd.f32 %v2250_v36, %v644_v0  ;;  %v885_v3 = vadd.f32 %v2437_v21, %v884_v61  ;;  %v526_v61 = vmax.f32 %v417_v10, 0.0 }
 0x1ad   :  { %v796_v4 = vmax.f32 %v645_v63, 0.0  ;;  %691 = vmatmul.f32.gmra.mxu1 %v521_v62  ;;  %v1070_v32 = vmax.f32 %v885_v3, 0.0 }
 0x1af   :  { %934 = vmatmul.f32.gmra.mxu2 %v796_v4  ;;  %1174 = vmatmul.f32.gmra.mxu3 %v1070_v32  ;;  %v2506_v32 = vpop.f32.mrf.mxu3 }
 0x1b2   :  { %v647_v6 = vpop.f32.mrf.mxu1  ;;  %v887_v7 = vpop.f32.mrf.mxu2 }
 0x1b3   :  { %v648_v15 = vadd.f32 %v2250_v36, %v647_v6  ;;  %v888_v1 = vadd.f32 %v2437_v21, %v887_v7 }
 0x1b5   :  { %v797_v12 = vmax.f32 %v648_v15, 0.0  ;;  %694 = vmatmul.f32.gmra.mxu1 %v522_v9  ;;  %v1071_v38 = vmax.f32 %v888_v1, 0.0  ;;  %v527_v9 = vmax.f32 %v420_v24, 0.0 }
 0x1b7   :  { %937 = vmatmul.f32.gmra.mxu2 %v797_v12  ;;  %1177 = vmatmul.f32.gmra.mxu3 %v1071_v38  ;;  %v2517_v35 = vpop.f32.mrf.mxu3 }
 0x1ba   :  { %v650_v18 = vpop.f32.mrf.mxu1  ;;  %v890_v22 = vpop.f32.mrf.mxu2 }
 0x1bb   :  { %v651_v8 = vadd.f32 %v2250_v36, %v650_v18  ;;  %v891_v44 = vadd.f32 %v2437_v21, %v890_v22 }
 0x1bd   :  { %v798_v27 = vmax.f32 %v651_v8, 0.0  ;;  %697 = vmatmul.f32.gmra.mxu1 %v523_v23  ;;  %v1072_v30 = vmax.f32 %v891_v44, 0.0  ;;  %v528_v23 = vmax.f32 %v423_v16, 0.0 }
 0x1bf   :  { %940 = vmatmul.f32.gmra.mxu2 %v798_v27  ;;  %1180 = vmatmul.f32.gmra.mxu3 %v1072_v30  ;;  %v426_v30 = vadd.f32 %v2093_v60, %v2347_v2  ;;  %v2529_v47 = vpop.f32.mrf.mxu3  ;;  %v429_v2 = vadd.f32 %v2093_v60, %v2365_v13  ;;  %v2545_v60 = vld [vmem:[%s2827_s2] ss:$0 sm:$0xff] }
 0x1c0   :  { %v432_v13 = vadd.f32 %v2545_v60, %v2383_v29  ;;  %v435_v24 = vadd.f32 %v2545_v60, %v2395_v42  ;;  %v438_v16 = vadd.f32 %v2545_v60, %v2411_v55 }
 0x1c2   :  { %v653_v37 = vpop.f32.mrf.mxu1  ;;  %v893_v14 = vpop.f32.mrf.mxu2 }
 0x1c3   :  { %v654_v50 = vadd.f32 %v2250_v36, %v653_v37  ;;  %v894_v41 = vadd.f32 %v2437_v21, %v893_v14 }
 0x1c5   :  { %v799_v43 = vmax.f32 %v654_v50, 0.0  ;;  %700 = vmatmul.f32.gmra.mxu1 %v524_v39  ;;  %v1073_v31 = vmax.f32 %v894_v41, 0.0  ;;  %v529_v39 = vmax.f32 %v426_v30, 0.0 }
 0x1c7   :  { %943 = vmatmul.f32.gmra.mxu2 %v799_v43  ;;  %1183 = vmatmul.f32.gmra.mxu3 %v1073_v31 }
 0x1ca   :  { %v656_v46 = vpop.f32.mrf.mxu1  ;;  %v896_v48 = vpop.f32.mrf.mxu2 }
 0x1cb   :  { %v657_v57 = vadd.f32 %v2250_v36, %v656_v46  ;;  %v897_v49 = vadd.f32 %v2437_v21, %v896_v48  ;;  %v530_v48 = vmax.f32 %v429_v2, 0.0 }
 0x1cd   :  { %v800_v54 = vmax.f32 %v657_v57, 0.0  ;;  %703 = vmatmul.f32.gmra.mxu1 %v525_v20  ;;  %v1074_v19 = vmax.f32 %v897_v49, 0.0  ;;  %v2540_v49 = vpop.f32.mrf.mxu3 }
 0x1cf   :  { %946 = vmatmul.f32.gmra.mxu2 %v800_v54  ;;  %1186 = vmatmul.f32.gmra.mxu3 %v1074_v19 }
 0x1d2   :  { %v659_v26 = vpop.f32.mrf.mxu1  ;;  %v899_v0 = vpop.f32.mrf.mxu2 }
 0x1d3   :  { %v660_v62 = vadd.f32 %v2250_v36, %v659_v26  ;;  %v900_v63 = vadd.f32 %v2437_v21, %v899_v0  ;;  %v1424_v26 = vld [vmem:[%s2826_s1 + $0x1a0] sm:$0xff]  ;;  %v531_v0 = vmax.f32 %v432_v13, 0.0 }
 0x1d4   :  { %1453 = vmatpush.msrb.mxu0 %v1424_v26  ;;  %1814 = vmatpush.msra.mxu3 %v1424_v26 }
 0x1d5   :  { %v801_v3 = vmax.f32 %v660_v62, 0.0  ;;  %706 = vmatmul.f32.gmra.mxu1 %v526_v61  ;;  %v1075_v4 = vmax.f32 %v900_v63, 0.0  ;;  %v1423_v63 = vld [vmem:[%s2826_s1 + $0x198] sm:$0xff] }
 0x1d6   :  { %1454 = vmatpush.msrb.mxu0 %v1423_v63  ;;  %1815 = vmatpush.msra.mxu3 %v1423_v63 }
 0x1d7   :  { %949 = vmatmul.f32.gmra.mxu2 %v801_v3  ;;  %1189 = vmatmul.f32.gmra.mxu3 %v1075_v4  ;;  %v2557_v4 = vpop.f32.mrf.mxu3 }
 0x1d8   :  { %1455 = vmatpush.msrb.mxu0 %v1422_v28  ;;  %1816 = vmatpush.msra.mxu3 %v1422_v28 }
 0x1da   :  { %v662_v6 = vpop.f32.mrf.mxu1  ;;  %v902_v7 = vpop.f32.mrf.mxu2 }
 0x1db   :  { %v663_v15 = vadd.f32 %v2250_v36, %v662_v6  ;;  %v903_v1 = vadd.f32 %v2437_v21, %v902_v7 }
 0x1dd   :  { %v802_v12 = vmax.f32 %v663_v15, 0.0  ;;  %709 = vmatmul.f32.gmra.mxu1 %v527_v9  ;;  %v1076_v38 = vmax.f32 %v903_v1, 0.0  ;;  %v532_v9 = vmax.f32 %v435_v24, 0.0 }
 0x1df   :  { %952 = vmatmul.f32.gmra.mxu2 %v802_v12  ;;  %1192 = vmatmul.f32.gmra.mxu3 %v1076_v38  ;;  %v2568_v42 = vpop.f32.mrf.mxu3 }
 0x1e2   :  { %v665_v18 = vpop.f32.mrf.mxu1  ;;  %v905_v22 = vpop.f32.mrf.mxu2 }
 0x1e3   :  { %v666_v8 = vadd.f32 %v2250_v36, %v665_v18  ;;  %v906_v44 = vadd.f32 %v2437_v21, %v905_v22  ;;  %v533_v22 = vmax.f32 %v438_v16, 0.0 }
 0x1e5   :  { %v803_v27 = vmax.f32 %v666_v8, 0.0  ;;  %712 = vmatmul.f32.gmra.mxu1 %v528_v23  ;;  %v1077_v51 = vmax.f32 %v906_v44, 0.0 }
 0x1e7   :  { %955 = vmatmul.f32.gmra.mxu2 %v803_v27  ;;  %1195 = vmatmul.f32.gmra.mxu3 %v1077_v51  ;;  %v441_v51 = vadd.f32 %v2545_v60, %v2416_v56  ;;  %v2574_v55 = vpop.f32.mrf.mxu3  ;;  %v2583_v56 = vld [vmem:[%s2827_s2 + $0x3] ss:$0 sm:$0xff] }
 0x1ea   :  { %v668_v37 = vpop.f32.mrf.mxu1  ;;  %v908_v14 = vpop.f32.mrf.mxu2 }
 0x1eb   :  { %v669_v50 = vadd.f32 %v2250_v36, %v668_v37  ;;  %v909_v41 = vadd.f32 %v2437_v21, %v908_v14  ;;  %v534_v37 = vmax.f32 %v441_v51, 0.0 }
 0x1ed   :  { %v804_v43 = vmax.f32 %v669_v50, 0.0  ;;  %v1078_v31 = vmax.f32 %v909_v41, 0.0  ;;  %715 = vmatmul.f32.gmra.mxu1 %v529_v39 }
 0x1ef   :  { %958 = vmatmul.f32.gmra.mxu2 %v804_v43  ;;  %1198 = vmatmul.f32.gmra.mxu3 %v1078_v31  ;;  %v444_v43 = vadd.f32 %v2545_v60, %v2426_v11 }
 0x1f1   :  { %v535_v45 = vmax.f32 %v444_v43, 0.0 }
 0x1f2   :  { %v671_v59 = vpop.f32.mrf.mxu1  ;;  %v911_v46 = vpop.f32.mrf.mxu2 }
 0x1f3   :  { %v672_v20 = vadd.f32 %v2250_v36, %v671_v59  ;;  %v912_v57 = vadd.f32 %v2437_v21, %v911_v46 }
 0x1f5   :  { %v805_v54 = vmax.f32 %v672_v20, 0.0  ;;  %v1079_v19 = vmax.f32 %v912_v57, 0.0  ;;  %718 = vmatmul.f32.gmra.mxu1 %v530_v48 }
 0x1f7   :  { %961 = vmatmul.f32.gmra.mxu2 %v805_v54  ;;  %1201 = vmatmul.f32.gmra.mxu3 %v1079_v19  ;;  %v447_v19 = vadd.f32 %v2545_v60, %v2446_v34  ;;  %v450_v34 = vadd.f32 %v2545_v60, %v2457_v53  ;;  %v453_v53 = vadd.f32 %v2545_v60, %v2466_v5 }
 0x1f8   :  { %v456_v5 = vadd.f32 %v2545_v60, %v2477_v17  ;;  %v459_v17 = vadd.f32 %v2545_v60, %v2486_v25 }
 0x1fa   :  { %v674_v58 = vpop.f32.mrf.mxu1  ;;  %v914_v10 = vpop.f32.mrf.mxu2 }
 0x1fb   :  { %v675_v61 = vadd.f32 %v2250_v36, %v674_v58  ;;  %v915_v62 = vadd.f32 %v2437_v21, %v914_v10  ;;  %v536_v10 = vmax.f32 %v447_v19, 0.0 }
 0x1fd   :  { %v806_v29 = vmax.f32 %v675_v61, 0.0  ;;  %v1080_v3 = vmax.f32 %v915_v62, 0.0  ;;  %721 = vmatmul.f32.gmra.mxu1 %v531_v0 }
 0x1ff   :  { %964 = vmatmul.f32.gmra.mxu2 %v806_v29  ;;  %1204 = vmatmul.f32.gmra.mxu3 %v1080_v3 }
 0x202   :  { %v677_v6 = vpop.f32.mrf.mxu1  ;;  %v917_v7 = vpop.f32.mrf.mxu2 }
 0x203   :  { %v678_v15 = vadd.f32 %v2250_v36, %v677_v6  ;;  %v918_v1 = vadd.f32 %v2437_v21, %v917_v7  ;;  %v537_v6 = vmax.f32 %v450_v34, 0.0 }
 0x205   :  { %v807_v12 = vmax.f32 %v678_v15, 0.0  ;;  %v1081_v38 = vmax.f32 %v918_v1, 0.0  ;;  %724 = vmatmul.f32.gmra.mxu1 %v532_v9 }
 0x207   :  { %967 = vmatmul.f32.gmra.mxu2 %v807_v12  ;;  %1207 = vmatmul.f32.gmra.mxu3 %v1081_v38 }
 0x20a   :  { %v680_v40 = vpop.f32.mrf.mxu1  ;;  %v920_v18 = vpop.f32.mrf.mxu2 }
 0x20b   :  { %v681_v23 = vadd.f32 %v2250_v36, %v680_v40  ;;  %v921_v8 = vadd.f32 %v2437_v21, %v920_v18 }
 0x20d   :  { %v808_v44 = vmax.f32 %v681_v23, 0.0  ;;  %v1082_v27 = vmax.f32 %v921_v8, 0.0  ;;  %727 = vmatmul.f32.gmra.mxu1 %v533_v22  ;;  %v538_v22 = vmax.f32 %v453_v53, 0.0 }
 0x20f   :  { %970 = vmatmul.f32.gmra.mxu2 %v808_v44  ;;  %1210 = vmatmul.f32.gmra.mxu3 %v1082_v27 }
 0x212   :  { %v683_v30 = vpop.f32.mrf.mxu1  ;;  %v923_v33 = vpop.f32.mrf.mxu2 }
 0x213   :  { %v684_v14 = vadd.f32 %v2250_v36, %v683_v30  ;;  %v924_v39 = vadd.f32 %v2437_v21, %v923_v33 }
 0x215   :  { %v809_v50 = vmax.f32 %v684_v14, 0.0  ;;  %v1083_v41 = vmax.f32 %v924_v39, 0.0  ;;  %730 = vmatmul.f32.gmra.mxu1 %v534_v37  ;;  %v539_v39 = vmax.f32 %v456_v5, 0.0 }
 0x217   :  { %973 = vmatmul.f32.gmra.mxu2 %v809_v50  ;;  %1213 = vmatmul.f32.gmra.mxu3 %v1083_v41 }
 0x21a   :  { %v686_v31 = vpop.f32.mrf.mxu1  ;;  %v926_v2 = vpop.f32.mrf.mxu2 }
 0x21b   :  { %v687_v59 = vadd.f32 %v2250_v36, %v686_v31  ;;  %v927_v46 = vadd.f32 %v2437_v21, %v926_v2  ;;  %v1166_v48 = vpop.f32.mrf.mxu3 }
 0x21c   :  { %v1167_v20 = vadd.f32 %v2583_v56, %v1166_v48 }
 0x21d   :  { %v810_v57 = vmax.f32 %v687_v59, 0.0  ;;  %v1084_v54 = vmax.f32 %v927_v46, 0.0  ;;  %733 = vmatmul.f32.gmra.mxu1 %v535_v45 }
 0x21e   :  { %v1358_v11 = vmax.f32 %v1167_v20, 0.0  ;;  %v540_v20 = vmax.f32 %v459_v17, 0.0 }
 0x21f   :  { %976 = vmatmul.f32.gmra.mxu2 %v810_v57  ;;  %1216 = vmatmul.f32.gmra.mxu3 %v1084_v54 }
 0x220   :  { %1456 = vmatmul.f32.vlgmr.msrb.gmra.mxu0 %v1358_v11 }
 0x222   :  { %v689_v13 = vpop.f32.mrf.mxu1  ;;  %v929_v58 = vpop.f32.mrf.mxu2 }
 0x223   :  { %v690_v26 = vadd.f32 %v2250_v36, %v689_v13  ;;  %v930_v0 = vadd.f32 %v2437_v21, %v929_v58  ;;  %v1169_v61 = vpop.f32.mrf.mxu3 }
 0x224   :  { %v1170_v62 = vadd.f32 %v2583_v56, %v1169_v61 }
 0x225   :  { %v811_v63 = vmax.f32 %v690_v26, 0.0  ;;  %v1085_v29 = vmax.f32 %v930_v0, 0.0  ;;  %736 = vmatmul.f32.gmra.mxu1 %v536_v10  ;;  %v462_v10 = vadd.f32 %v2545_v60, %v2497_v52  ;;  %v465_v52 = vadd.f32 %v2545_v60, %v2506_v32 }
 0x226   :  { %v1359_v3 = vmax.f32 %v1170_v62, 0.0  ;;  %v468_v32 = vadd.f32 %v2545_v60, %v2517_v35  ;;  %v471_v35 = vadd.f32 %v2545_v60, %v2529_v47  ;;  %v474_v47 = vadd.f32 %v2545_v60, %v2540_v49 }
 0x227   :  { %979 = vmatmul.f32.gmra.mxu2 %v811_v63  ;;  %1219 = vmatmul.f32.gmra.mxu3 %v1085_v29  ;;  %v541_v61 = vmax.f32 %v462_v10, 0.0  ;;  %v477_v49 = vadd.f32 %v2545_v60, %v2557_v4  ;;  %v480_v4 = vadd.f32 %v2545_v60, %v2568_v42  ;;  %v483_v42 = vadd.f32 %v2545_v60, %v2574_v55 }
 0x228   :  { %1459 = vmatmul.f32.gmra.mxu0 %v1359_v3 }
 0x22a   :  { %v692_v28 = vpop.f32.mrf.mxu1  ;;  %v932_v24 = vpop.f32.mrf.mxu2 }
 0x22b   :  { %v693_v7 = vadd.f32 %v2250_v36, %v692_v28  ;;  %v933_v9 = vadd.f32 %v2437_v21, %v932_v24  ;;  %v1172_v15 = vpop.f32.mrf.mxu3 }
 0x22c   :  { %v1173_v1 = vadd.f32 %v2583_v56, %v1172_v15 }
 0x22d   :  { %v812_v12 = vmax.f32 %v693_v7, 0.0  ;;  %v1086_v38 = vmax.f32 %v933_v9, 0.0  ;;  %739 = vmatmul.f32.gmra.mxu1 %v537_v6  ;;  %v542_v9 = vmax.f32 %v465_v52, 0.0  ;;  %v547_v52 = vmax.f32 %v480_v4, 0.0 }
 0x22e   :  { %v1360_v16 = vmax.f32 %v1173_v1, 0.0 }
 0x22f   :  { %982 = vmatmul.f32.gmra.mxu2 %v812_v12  ;;  %1222 = vmatmul.f32.gmra.mxu3 %v1086_v38 }
 0x230   :  { %1462 = vmatmul.f32.gmra.mxu0 %v1360_v16 }
 0x232   :  { %v695_v40 = vpop.f32.mrf.mxu1  ;;  %v935_v18 = vpop.f32.mrf.mxu2 }
 0x233   :  { %v696_v23 = vadd.f32 %v2250_v36, %v695_v40  ;;  %v936_v8 = vadd.f32 %v2437_v21, %v935_v18  ;;  %v1175_v44 = vpop.f32.mrf.mxu3 }
 0x234   :  { %v1176_v27 = vadd.f32 %v2583_v56, %v1175_v44 }
 0x235   :  { %v813_v51 = vmax.f32 %v696_v23, 0.0  ;;  %v1087_v30 = vmax.f32 %v936_v8, 0.0  ;;  %742 = vmatmul.f32.gmra.mxu1 %v538_v22  ;;  %v543_v23 = vmax.f32 %v468_v32, 0.0 }
 0x236   :  { %v1361_v33 = vmax.f32 %v1176_v27, 0.0 }
 0x237   :  { %985 = vmatmul.f32.gmra.mxu2 %v813_v51  ;;  %1225 = vmatmul.f32.gmra.mxu3 %v1087_v30 }
 0x238   :  { %1465 = vmatmul.f32.gmra.mxu0 %v1361_v33 }
 0x23a   :  { %v698_v37 = vpop.f32.mrf.mxu1  ;;  %v938_v14 = vpop.f32.mrf.mxu2 }
 0x23b   :  { %v699_v50 = vadd.f32 %v2250_v36, %v698_v37  ;;  %v939_v41 = vadd.f32 %v2437_v21, %v938_v14  ;;  %v1178_v43 = vpop.f32.mrf.mxu3  ;;  %v2613_v36 = vld [vmem:[%s2827_s2 + $0x1] ss:$0 sm:$0xff] }
 0x23c   :  { %v1179_v31 = vadd.f32 %v2583_v56, %v1178_v43 }
 0x23d   :  { %v814_v2 = vmax.f32 %v699_v50, 0.0  ;;  %v1088_v45 = vmax.f32 %v939_v41, 0.0  ;;  %745 = vmatmul.f32.gmra.mxu1 %v539_v39  ;;  %v544_v39 = vmax.f32 %v471_v35, 0.0 }
 0x23e   :  { %v1362_v59 = vmax.f32 %v1179_v31, 0.0 }
 0x23f   :  { %988 = vmatmul.f32.gmra.mxu2 %v814_v2  ;;  %1228 = vmatmul.f32.gmra.mxu3 %v1088_v45 }
 0x240   :  { %1468 = vmatmul.f32.gmra.mxu0 %v1362_v59 }
 0x242   :  { %v701_v46 = vpop.f32.mrf.mxu1  ;;  %v941_v48 = vpop.f32.mrf.mxu2 }
 0x243   :  { %v702_v57 = vadd.f32 %v2613_v36, %v701_v46  ;;  %v942_v54 = vadd.f32 %v2437_v21, %v941_v48  ;;  %v1181_v11 = vpop.f32.mrf.mxu3  ;;  %v545_v48 = vmax.f32 %v474_v47, 0.0 }
 0x244   :  { %v1182_v19 = vadd.f32 %v2583_v56, %v1181_v11 }
 0x245   :  { %v815_v13 = vmax.f32 %v702_v57, 0.0  ;;  %v1089_v25 = vmax.f32 %v942_v54, 0.0  ;;  %748 = vmatmul.f32.gmra.mxu1 %v540_v20 }
 0x246   :  { %v1363_v58 = vmax.f32 %v1182_v19, 0.0 }
 0x247   :  { %991 = vmatmul.f32.gmra.mxu2 %v815_v13  ;;  %1231 = vmatmul.f32.gmra.mxu3 %v1089_v25 }
 0x248   :  { %1471 = vmatmul.f32.gmra.mxu0 %v1363_v58 }
 0x24a   :  { %v704_v26 = vpop.f32.mrf.mxu1  ;;  %v944_v0 = vpop.f32.mrf.mxu2 }
 0x24b   :  { %v705_v62 = vadd.f32 %v2613_v36, %v704_v26  ;;  %v945_v63 = vadd.f32 %v2437_v21, %v944_v0  ;;  %v1184_v29 = vpop.f32.mrf.mxu3  ;;  %v546_v26 = vmax.f32 %v477_v49, 0.0 }
 0x24c   :  { %v1185_v3 = vadd.f32 %v2583_v56, %v1184_v29 }
 0x24d   :  { %v816_v34 = vmax.f32 %v705_v62, 0.0  ;;  %v1090_v28 = vmax.f32 %v945_v63, 0.0  ;;  %751 = vmatmul.f32.gmra.mxu1 %v541_v61 }
 0x24e   :  { %v1364_v24 = vmax.f32 %v1185_v3, 0.0 }
 0x24f   :  { %994 = vmatmul.f32.gmra.mxu2 %v816_v34  ;;  %1234 = vmatmul.f32.gmra.mxu3 %v1090_v28 }
 0x250   :  { %1474 = vmatmul.f32.gmra.mxu0 %v1364_v24 }
 0x252   :  { %v707_v6 = vpop.f32.mrf.mxu1  ;;  %v947_v7 = vpop.f32.mrf.mxu2 }
 0x253   :  { %v708_v15 = vadd.f32 %v2613_v36, %v707_v6  ;;  %v948_v1 = vadd.f32 %v2437_v21, %v947_v7  ;;  %v1187_v12 = vpop.f32.mrf.mxu3 }
 0x254   :  { %v1188_v38 = vadd.f32 %v2583_v56, %v1187_v12 }
 0x255   :  { %v817_v16 = vmax.f32 %v708_v15, 0.0  ;;  %v1091_v53 = vmax.f32 %v948_v1, 0.0  ;;  %754 = vmatmul.f32.gmra.mxu1 %v542_v9 }
 0x256   :  { %v1365_v40 = vmax.f32 %v1188_v38, 0.0 }
 0x257   :  { %997 = vmatmul.f32.gmra.mxu2 %v817_v16  ;;  %1237 = vmatmul.f32.gmra.mxu3 %v1091_v53 }
 0x258   :  { %1477 = vmatmul.f32.gmra.mxu0 %v1365_v40  ;;  %v548_v40 = vmax.f32 %v483_v42, 0.0 }
 0x25a   :  { %v710_v18 = vpop.f32.mrf.mxu1  ;;  %v950_v22 = vpop.f32.mrf.mxu2 }
 0x25b   :  { %v711_v8 = vadd.f32 %v2613_v36, %v710_v18  ;;  %v951_v44 = vadd.f32 %v2437_v21, %v950_v22  ;;  %v1190_v27 = vpop.f32.mrf.mxu3 }
 0x25c   :  { %v1191_v51 = vadd.f32 %v2583_v56, %v1190_v27 }
 0x25d   :  { %v818_v30 = vmax.f32 %v711_v8, 0.0  ;;  %v1092_v33 = vmax.f32 %v951_v44, 0.0  ;;  %757 = vmatmul.f32.gmra.mxu1 %v543_v23 }
 0x25e   :  { %v1366_v5 = vmax.f32 %v1191_v51, 0.0 }
 0x25f   :  { %1000 = vmatmul.f32.gmra.mxu2 %v818_v30  ;;  %1240 = vmatmul.f32.gmra.mxu3 %v1092_v33 }
 0x260   :  { %1480 = vmatmul.f32.gmra.mxu0 %v1366_v5 }
 0x262   :  { %v713_v37 = vpop.f32.mrf.mxu1  ;;  %v953_v14 = vpop.f32.mrf.mxu2 }
 0x263   :  { %v714_v50 = vadd.f32 %v2613_v36, %v713_v37  ;;  %v954_v41 = vadd.f32 %v2437_v21, %v953_v14  ;;  %v1193_v43 = vpop.f32.mrf.mxu3 }
 0x264   :  { %v1194_v31 = vadd.f32 %v2583_v56, %v1193_v43 }
 0x265   :  { %v819_v2 = vmax.f32 %v714_v50, 0.0  ;;  %v1093_v45 = vmax.f32 %v954_v41, 0.0  ;;  %760 = vmatmul.f32.gmra.mxu1 %v544_v39 }
 0x266   :  { %v1367_v59 = vmax.f32 %v1194_v31, 0.0 }
 0x267   :  { %1003 = vmatmul.f32.gmra.mxu2 %v819_v2  ;;  %1243 = vmatmul.f32.gmra.mxu3 %v1093_v45 }
 0x268   :  { %1483 = vmatmul.f32.gmra.mxu0 %v1367_v59 }
 0x26a   :  { %v716_v17 = vpop.f32.mrf.mxu1  ;;  %v956_v46 = vpop.f32.mrf.mxu2 }
 0x26b   :  { %v717_v20 = vadd.f32 %v2613_v36, %v716_v17  ;;  %v957_v57 = vadd.f32 %v2437_v21, %v956_v46  ;;  %v1196_v54 = vpop.f32.mrf.mxu3 }
 0x26c   :  { %v1197_v11 = vadd.f32 %v2583_v56, %v1196_v54 }
 0x26d   :  { %v820_v19 = vmax.f32 %v717_v20, 0.0  ;;  %v1094_v13 = vmax.f32 %v957_v57, 0.0  ;;  %763 = vmatmul.f32.gmra.mxu1 %v545_v48  ;;  %v2667_v48 = vld [vmem:[%s2827_s2 + $0x4] ss:$0 sm:$0xff] }
 0x26e   :  { %v1368_v25 = vmax.f32 %v1197_v11, 0.0 }
 0x26f   :  { %1006 = vmatmul.f32.gmra.mxu2 %v820_v19  ;;  %1246 = vmatmul.f32.gmra.mxu3 %v1094_v13 }
 0x270   :  { %1486 = vmatmul.f32.gmra.mxu0 %v1368_v25 }
 0x272   :  { %v719_v58 = vpop.f32.mrf.mxu1  ;;  %v959_v10 = vpop.f32.mrf.mxu2 }
 0x273   :  { %v720_v0 = vadd.f32 %v2613_v36, %v719_v58  ;;  %v960_v61 = vadd.f32 %v2437_v21, %v959_v10  ;;  %v1199_v62 = vpop.f32.mrf.mxu3 }
 0x274   :  { %v1200_v63 = vadd.f32 %v2583_v56, %v1199_v62 }
 0x275   :  { %v821_v29 = vmax.f32 %v720_v0, 0.0  ;;  %v1095_v3 = vmax.f32 %v960_v61, 0.0  ;;  %766 = vmatmul.f32.gmra.mxu1 %v546_v26 }
 0x276   :  { %v1369_v34 = vmax.f32 %v1200_v63, 0.0 }
 0x277   :  { %1009 = vmatmul.f32.gmra.mxu2 %v821_v29  ;;  %1249 = vmatmul.f32.gmra.mxu3 %v1095_v3 }
 0x278   :  { %1489 = vmatmul.f32.gmra.mxu0 %v1369_v34 }
 0x27a   :  { %v722_v28 = vpop.f32.mrf.mxu1  ;;  %v962_v24 = vpop.f32.mrf.mxu2 }
 0x27b   :  { %v723_v6 = vadd.f32 %v2613_v36, %v722_v28  ;;  %v963_v7 = vadd.f32 %v2437_v21, %v962_v24  ;;  %v1202_v9 = vpop.f32.mrf.mxu3 }
 0x27c   :  { %v1203_v15 = vadd.f32 %v2583_v56, %v1202_v9 }
 0x27d   :  { %v822_v1 = vmax.f32 %v723_v6, 0.0  ;;  %v1096_v12 = vmax.f32 %v963_v7, 0.0  ;;  %769 = vmatmul.f32.gmra.mxu1 %v547_v52 }
 0x27e   :  { %v1370_v38 = vmax.f32 %v1203_v15, 0.0 }
 0x27f   :  { %1012 = vmatmul.f32.gmra.mxu2 %v822_v1  ;;  %1252 = vmatmul.f32.gmra.mxu3 %v1096_v12 }
 0x280   :  { %1492 = vmatmul.f32.gmra.mxu0 %v1370_v38 }
 0x282   :  { %v725_v16 = vpop.f32.mrf.mxu1  ;;  %v965_v53 = vpop.f32.mrf.mxu2 }
 0x283   :  { %v726_v32 = vadd.f32 %v2613_v36, %v725_v16  ;;  %v966_v18 = vadd.f32 %v2437_v21, %v965_v53  ;;  %v1205_v22 = vpop.f32.mrf.mxu3 }
 0x284   :  { %v1206_v23 = vadd.f32 %v2583_v56, %v1205_v22 }
 0x285   :  { %v823_v8 = vmax.f32 %v726_v32, 0.0  ;;  %v1097_v44 = vmax.f32 %v966_v18, 0.0  ;;  %772 = vmatmul.f32.gmra.mxu1 %v548_v40 }
 0x286   :  { %v1371_v27 = vmax.f32 %v1206_v23, 0.0 }
 0x287   :  { %1015 = vmatmul.f32.gmra.mxu2 %v823_v8  ;;  %1255 = vmatmul.f32.gmra.mxu3 %v1097_v44 }
 0x288   :  { %1495 = vmatmul.f32.gmra.mxu0 %v1371_v27 }
 0x28a   :  { %v728_v60 = vpop.f32.mrf.mxu1  ;;  %v968_v55 = vpop.f32.mrf.mxu2 }
 0x28b   :  { %v729_v51 = vadd.f32 %v2613_v36, %v728_v60  ;;  %v969_v30 = vadd.f32 %v2437_v21, %v968_v55  ;;  %v1208_v33 = vpop.f32.mrf.mxu3 }
 0x28c   :  { %v1209_v5 = vadd.f32 %v2583_v56, %v1208_v33 }
 0x28d   :  { %v824_v35 = vmax.f32 %v729_v51, 0.0  ;;  %v1098_v37 = vmax.f32 %v969_v30, 0.0 }
 0x28e   :  { %v1372_v14 = vmax.f32 %v1209_v5, 0.0 }
 0x28f   :  { %1018 = vmatmul.f32.gmra.mxu2 %v824_v35  ;;  %1258 = vmatmul.f32.gmra.mxu3 %v1098_v37 }
 0x290   :  { %1498 = vmatmul.f32.gmra.mxu0 %v1372_v14 }
 0x292   :  { %v731_v39 = vpop.f32.mrf.mxu1  ;;  %v971_v50 = vpop.f32.mrf.mxu2 }
 0x293   :  { %v732_v41 = vadd.f32 %v2613_v36, %v731_v39  ;;  %v972_v43 = vadd.f32 %v2437_v21, %v971_v50  ;;  %v1211_v31 = vpop.f32.mrf.mxu3 }
 0x294   :  { %v1212_v2 = vadd.f32 %v2583_v56, %v1211_v31 }
 0x295   :  { %v825_v45 = vmax.f32 %v732_v41, 0.0  ;;  %v1099_v59 = vmax.f32 %v972_v43, 0.0 }
 0x296   :  { %v1373_v47 = vmax.f32 %v1212_v2, 0.0 }
 0x297   :  { %1021 = vmatmul.f32.gmra.mxu2 %v825_v45  ;;  %1261 = vmatmul.f32.gmra.mxu3 %v1099_v59 }
 0x298   :  { %1501 = vmatmul.f32.gmra.mxu0 %v1373_v47 }
 0x29a   :  { %v734_v17 = vpop.f32.mrf.mxu1  ;;  %v974_v46 = vpop.f32.mrf.mxu2 }
 0x29b   :  { %v735_v20 = vadd.f32 %v2613_v36, %v734_v17  ;;  %v975_v57 = vadd.f32 %v2437_v21, %v974_v46  ;;  %v1214_v54 = vpop.f32.mrf.mxu3 }
 0x29c   :  { %v1215_v11 = vadd.f32 %v2583_v56, %v1214_v54 }
 0x29d   :  { %v826_v19 = vmax.f32 %v735_v20, 0.0  ;;  %v1100_v13 = vmax.f32 %v975_v57, 0.0  ;;  %v1457_v25 = vpop.f32.mrf.mxu0 }
 0x29e   :  { %v1374_v49 = vmax.f32 %v1215_v11, 0.0  ;;  %v1458_v58 = vadd.f32 %v2667_v48, %v1457_v25 }
 0x29f   :  { %1024 = vmatmul.f32.gmra.mxu2 %v826_v19  ;;  %1264 = vmatmul.f32.gmra.mxu3 %v1100_v13 }
 0x2a0   :  { %1649 = vst [vmem:[#allocation2] sm:$0xff] %v1458_v58  ;;  %1504 = vmatmul.f32.gmra.mxu0 %v1374_v49 }
 0x2a2   :  { %v737_v10 = vpop.f32.mrf.mxu1  ;;  %v977_v26 = vpop.f32.mrf.mxu2 }
 0x2a3   :  { %v738_v0 = vadd.f32 %v2613_v36, %v737_v10  ;;  %v978_v61 = vadd.f32 %v2437_v21, %v977_v26  ;;  %v1217_v62 = vpop.f32.mrf.mxu3 }
 0x2a4   :  { %v1218_v63 = vadd.f32 %v2583_v56, %v1217_v62 }
 0x2a5   :  { %v827_v29 = vmax.f32 %v738_v0, 0.0  ;;  %v1101_v3 = vmax.f32 %v978_v61, 0.0  ;;  %v1460_v34 = vpop.f32.mrf.mxu0 }
 0x2a6   :  { %v1375_v4 = vmax.f32 %v1218_v63, 0.0  ;;  %v1461_v28 = vadd.f32 %v2667_v48, %v1460_v34 }
 0x2a7   :  { %1027 = vmatmul.f32.gmra.mxu2 %v827_v29  ;;  %1267 = vmatmul.f32.gmra.mxu3 %v1101_v3 }
 0x2a8   :  { %1650 = vst [vmem:[#allocation2 + $0x8] sm:$0xff] %v1461_v28  ;;  %1507 = vmatmul.f32.gmra.mxu0 %v1375_v4 }
 0x2aa   :  { %v740_v24 = vpop.f32.mrf.mxu1  ;;  %v980_v52 = vpop.f32.mrf.mxu2 }
 0x2ab   :  { %v741_v6 = vadd.f32 %v2613_v36, %v740_v24  ;;  %v981_v7 = vadd.f32 %v2437_v21, %v980_v52  ;;  %v1220_v9 = vpop.f32.mrf.mxu3  ;;  %v2685_v21 = vld [vmem:[%s2827_s2 + $0x2] ss:$0 sm:$0xff] }
 0x2ac   :  { %v1221_v15 = vadd.f32 %v2583_v56, %v1220_v9 }
 0x2ad   :  { %v828_v1 = vmax.f32 %v741_v6, 0.0  ;;  %v1102_v12 = vmax.f32 %v981_v7, 0.0  ;;  %v1463_v38 = vpop.f32.mrf.mxu0 }
 0x2ae   :  { %v1376_v42 = vmax.f32 %v1221_v15, 0.0  ;;  %v1464_v16 = vadd.f32 %v2667_v48, %v1463_v38 }
 0x2af   :  { %1030 = vmatmul.f32.gmra.mxu2 %v828_v1  ;;  %1270 = vmatmul.f32.gmra.mxu3 %v1102_v12 }
 0x2b0   :  { %1651 = vst [vmem:[#allocation2 + $0x10] sm:$0xff] %v1464_v16  ;;  %1510 = vmatmul.f32.gmra.mxu0 %v1376_v42 }
 0x2b2   :  { %v743_v53 = vpop.f32.mrf.mxu1  ;;  %v983_v40 = vpop.f32.mrf.mxu2 }
 0x2b3   :  { %v744_v32 = vadd.f32 %v2613_v36, %v743_v53  ;;  %v984_v18 = vadd.f32 %v2685_v21, %v983_v40  ;;  %v1223_v22 = vpop.f32.mrf.mxu3 }
 0x2b4   :  { %v1224_v23 = vadd.f32 %v2583_v56, %v1223_v22 }
 0x2b5   :  { %v829_v8 = vmax.f32 %v744_v32, 0.0  ;;  %v1103_v44 = vmax.f32 %v984_v18, 0.0  ;;  %v1466_v27 = vpop.f32.mrf.mxu0 }
 0x2b6   :  { %v1377_v60 = vmax.f32 %v1224_v23, 0.0  ;;  %v1467_v55 = vadd.f32 %v2667_v48, %v1466_v27 }
 0x2b7   :  { %1033 = vmatmul.f32.gmra.mxu2 %v829_v8  ;;  %1273 = vmatmul.f32.gmra.mxu3 %v1103_v44 }
 0x2b8   :  { %1652 = vst [vmem:[#allocation2 + $0x18] sm:$0xff] %v1467_v55  ;;  %1513 = vmatmul.f32.gmra.mxu0 %v1377_v60 }
 0x2ba   :  { %v746_v51 = vpop.f32.mrf.mxu1  ;;  %v986_v30 = vpop.f32.mrf.mxu2 }
 0x2bb   :  { %v747_v33 = vadd.f32 %v2613_v36, %v746_v51  ;;  %v987_v5 = vadd.f32 %v2685_v21, %v986_v30  ;;  %v1226_v35 = vpop.f32.mrf.mxu3 }
 0x2bc   :  { %v1227_v37 = vadd.f32 %v2583_v56, %v1226_v35 }
 0x2bd   :  { %v830_v14 = vmax.f32 %v747_v33, 0.0  ;;  %v1104_v39 = vmax.f32 %v987_v5, 0.0  ;;  %v1469_v50 = vpop.f32.mrf.mxu0 }
 0x2be   :  { %v1378_v41 = vmax.f32 %v1227_v37, 0.0  ;;  %v1470_v43 = vadd.f32 %v2667_v48, %v1469_v50 }
 0x2bf   :  { %1036 = vmatmul.f32.gmra.mxu2 %v830_v14  ;;  %1276 = vmatmul.f32.gmra.mxu3 %v1104_v39 }
 0x2c0   :  { %1653 = vst [vmem:[#allocation2 + $0x20] sm:$0xff] %v1470_v43  ;;  %1516 = vmatmul.f32.gmra.mxu0 %v1378_v41 }
 0x2c2   :  { %v749_v31 = vpop.f32.mrf.mxu1  ;;  %v989_v2 = vpop.f32.mrf.mxu2 }
 0x2c3   :  { %v750_v45 = vadd.f32 %v2613_v36, %v749_v31  ;;  %v990_v59 = vadd.f32 %v2685_v21, %v989_v2  ;;  %v1229_v47 = vpop.f32.mrf.mxu3 }
 0x2c4   :  { %v1230_v17 = vadd.f32 %v2583_v56, %v1229_v47 }
 0x2c5   :  { %v831_v46 = vmax.f32 %v750_v45, 0.0  ;;  %v1105_v20 = vmax.f32 %v990_v59, 0.0  ;;  %v1472_v57 = vpop.f32.mrf.mxu0 }
 0x2c6   :  { %v1379_v54 = vmax.f32 %v1230_v17, 0.0  ;;  %v1473_v11 = vadd.f32 %v2667_v48, %v1472_v57 }
 0x2c7   :  { %1039 = vmatmul.f32.gmra.mxu2 %v831_v46  ;;  %1279 = vmatmul.f32.gmra.mxu3 %v1105_v20 }
 0x2c8   :  { %1654 = vst [vmem:[#allocation2 + $0x28] sm:$0xff] %v1473_v11  ;;  %1519 = vmatmul.f32.gmra.mxu0 %v1379_v54 }
 0x2ca   :  { %v752_v19 = vpop.f32.mrf.mxu1  ;;  %v992_v13 = vpop.f32.mrf.mxu2 }
 0x2cb   :  { %v753_v25 = vadd.f32 %v2613_v36, %v752_v19  ;;  %v993_v49 = vadd.f32 %v2685_v21, %v992_v13  ;;  %v1232_v58 = vpop.f32.mrf.mxu3 }
 0x2cc   :  { %v1233_v10 = vadd.f32 %v2583_v56, %v1232_v58 }
 0x2cd   :  { %v832_v26 = vmax.f32 %v753_v25, 0.0  ;;  %v1106_v0 = vmax.f32 %v993_v49, 0.0  ;;  %v1475_v61 = vpop.f32.mrf.mxu0 }
 0x2ce   :  { %v1380_v62 = vmax.f32 %v1233_v10, 0.0  ;;  %v1476_v63 = vadd.f32 %v2667_v48, %v1475_v61 }
 0x2cf   :  { %1042 = vmatmul.f32.gmra.mxu2 %v832_v26  ;;  %1282 = vmatmul.f32.gmra.mxu3 %v1106_v0 }
 0x2d0   :  { %1655 = vst [vmem:[#allocation2 + $0x30] sm:$0xff] %v1476_v63  ;;  %1522 = vmatmul.f32.gmra.mxu0 %v1380_v62 }
 0x2d2   :  { %v755_v29 = vpop.f32.mrf.mxu1  ;;  %v995_v3 = vpop.f32.mrf.mxu2 }
 0x2d3   :  { %v756_v34 = vadd.f32 %v2613_v36, %v755_v29  ;;  %v996_v4 = vadd.f32 %v2685_v21, %v995_v3  ;;  %v1235_v28 = vpop.f32.mrf.mxu3 }
 0x2d4   :  { %v1236_v24 = vadd.f32 %v2583_v56, %v1235_v28 }
 0x2d5   :  { %v833_v52 = vmax.f32 %v756_v34, 0.0  ;;  %v1107_v6 = vmax.f32 %v996_v4, 0.0  ;;  %v1478_v7 = vpop.f32.mrf.mxu0 }
 0x2d6   :  { %v1381_v9 = vmax.f32 %v1236_v24, 0.0  ;;  %v1479_v15 = vadd.f32 %v2667_v48, %v1478_v7 }
 0x2d7   :  { %1045 = vmatmul.f32.gmra.mxu2 %v833_v52  ;;  %1285 = vmatmul.f32.gmra.mxu3 %v1107_v6 }
 0x2d8   :  { %1656 = vst [vmem:[#allocation2 + $0x38] sm:$0xff] %v1479_v15  ;;  %1525 = vmatmul.f32.gmra.mxu0 %v1381_v9 }
 0x2da   :  { %v758_v1 = vpop.f32.mrf.mxu1  ;;  %v998_v12 = vpop.f32.mrf.mxu2 }
 0x2db   :  { %v759_v38 = vadd.f32 %v2613_v36, %v758_v1  ;;  %v999_v42 = vadd.f32 %v2685_v21, %v998_v12  ;;  %v1238_v16 = vpop.f32.mrf.mxu3 }
 0x2dc   :  { %v1239_v53 = vadd.f32 %v2583_v56, %v1238_v16 }
 0x2dd   :  { %v834_v40 = vmax.f32 %v759_v38, 0.0  ;;  %v1108_v32 = vmax.f32 %v999_v42, 0.0  ;;  %v1481_v18 = vpop.f32.mrf.mxu0 }
 0x2de   :  { %v1382_v22 = vmax.f32 %v1239_v53, 0.0  ;;  %v1482_v23 = vadd.f32 %v2667_v48, %v1481_v18 }
 0x2df   :  { %1048 = vmatmul.f32.gmra.mxu2 %v834_v40  ;;  %1288 = vmatmul.f32.gmra.mxu3 %v1108_v32 }
 0x2e0   :  { %1657 = vst [vmem:[#allocation2 + $0x40] sm:$0xff] %v1482_v23  ;;  %1528 = vmatmul.f32.gmra.mxu0 %v1382_v22 }
 0x2e2   :  { %v761_v8 = vpop.f32.mrf.mxu1  ;;  %v1001_v44 = vpop.f32.mrf.mxu2 }
 0x2e3   :  { %v762_v27 = vadd.f32 %v2613_v36, %v761_v8  ;;  %v1002_v60 = vadd.f32 %v2685_v21, %v1001_v44  ;;  %v1241_v55 = vpop.f32.mrf.mxu3 }
 0x2e4   :  { %v1242_v51 = vadd.f32 %v2583_v56, %v1241_v55 }
 0x2e5   :  { %v835_v30 = vmax.f32 %v762_v27, 0.0  ;;  %v1109_v33 = vmax.f32 %v1002_v60, 0.0  ;;  %v1484_v5 = vpop.f32.mrf.mxu0 }
 0x2e6   :  { %v1383_v35 = vmax.f32 %v1242_v51, 0.0  ;;  %v1485_v37 = vadd.f32 %v2667_v48, %v1484_v5 }
 0x2e7   :  { %1051 = vmatmul.f32.gmra.mxu2 %v835_v30  ;;  %1291 = vmatmul.f32.gmra.mxu3 %v1109_v33 }
 0x2e8   :  { %1658 = vst [vmem:[#allocation2 + $0x48] sm:$0xff] %v1485_v37  ;;  %1531 = vmatmul.f32.gmra.mxu0 %v1383_v35 }
 0x2ea   :  { %v764_v14 = vpop.f32.mrf.mxu1  ;;  %v1004_v39 = vpop.f32.mrf.mxu2 }
 0x2eb   :  { %v765_v50 = vadd.f32 %v2613_v36, %v764_v14  ;;  %v1005_v41 = vadd.f32 %v2685_v21, %v1004_v39  ;;  %v1244_v43 = vpop.f32.mrf.mxu3 }
 0x2ec   :  { %v1245_v31 = vadd.f32 %v2583_v56, %v1244_v43 }
 0x2ed   :  { %v836_v2 = vmax.f32 %v765_v50, 0.0  ;;  %v1110_v45 = vmax.f32 %v1005_v41, 0.0  ;;  %v1487_v59 = vpop.f32.mrf.mxu0 }
 0x2ee   :  { %v1384_v47 = vmax.f32 %v1245_v31, 0.0  ;;  %v1488_v17 = vadd.f32 %v2667_v48, %v1487_v59 }
 0x2ef   :  { %1054 = vmatmul.f32.gmra.mxu2 %v836_v2  ;;  %1294 = vmatmul.f32.gmra.mxu3 %v1110_v45 }
 0x2f0   :  { %1659 = vst [vmem:[#allocation2 + $0x50] sm:$0xff] %v1488_v17  ;;  %1534 = vmatmul.f32.gmra.mxu0 %v1384_v47 }
 0x2f2   :  { %v767_v46 = vpop.f32.mrf.mxu1  ;;  %v1007_v20 = vpop.f32.mrf.mxu2 }
 0x2f3   :  { %v768_v57 = vadd.f32 %v2613_v36, %v767_v46  ;;  %v1008_v54 = vadd.f32 %v2685_v21, %v1007_v20  ;;  %v1247_v11 = vpop.f32.mrf.mxu3 }
 0x2f4   :  { %v1248_v19 = vadd.f32 %v2583_v56, %v1247_v11 }
 0x2f5   :  { %v837_v13 = vmax.f32 %v768_v57, 0.0  ;;  %v1111_v25 = vmax.f32 %v1008_v54, 0.0  ;;  %v1490_v49 = vpop.f32.mrf.mxu0 }
 0x2f6   :  { %v1385_v58 = vmax.f32 %v1248_v19, 0.0  ;;  %v1491_v10 = vadd.f32 %v2667_v48, %v1490_v49 }
 0x2f7   :  { %1057 = vmatmul.f32.gmra.mxu2 %v837_v13  ;;  %1297 = vmatmul.f32.gmra.mxu3 %v1111_v25 }
 0x2f8   :  { %1660 = vst [vmem:[#allocation2 + $0x58] sm:$0xff] %v1491_v10  ;;  %1537 = vmatmul.f32.gmra.mxu0 %v1385_v58 }
 0x2fa   :  { %v770_v26 = vpop.f32.mrf.mxu1  ;;  %v1010_v0 = vpop.f32.mrf.mxu2 }
 0x2fb   :  { %v771_v61 = vadd.f32 %v2613_v36, %v770_v26  ;;  %v1011_v62 = vadd.f32 %v2685_v21, %v1010_v0  ;;  %v1250_v63 = vpop.f32.mrf.mxu3 }
 0x2fc   :  { %v1251_v29 = vadd.f32 %v2583_v56, %v1250_v63 }
 0x2fd   :  { %v838_v3 = vmax.f32 %v771_v61, 0.0  ;;  %v1112_v34 = vmax.f32 %v1011_v62, 0.0  ;;  %v1493_v4 = vpop.f32.mrf.mxu0 }
 0x2fe   :  { %v1386_v28 = vmax.f32 %v1251_v29, 0.0  ;;  %v1494_v24 = vadd.f32 %v2667_v48, %v1493_v4 }
 0x2ff   :  { %1060 = vmatmul.f32.gmra.mxu2 %v838_v3  ;;  %1300 = vmatmul.f32.gmra.mxu3 %v1112_v34 }
 0x300   :  { %1661 = vst [vmem:[#allocation2 + $0x60] sm:$0xff] %v1494_v24  ;;  %1540 = vmatmul.f32.gmra.mxu0 %v1386_v28 }
 0x302   :  { %v773_v52 = vpop.f32.mrf.mxu1  ;;  %v1013_v6 = vpop.f32.mrf.mxu2 }
 0x303   :  { %v774_v7 = vadd.f32 %v2613_v36, %v773_v52  ;;  %v1014_v9 = vadd.f32 %v2685_v21, %v1013_v6  ;;  %v1253_v15 = vpop.f32.mrf.mxu3  ;;  %v2752_v6 = vld [vmem:[%s2827_s2 + $0x3] ss:$0 sm:$0xff] }
 0x304   :  { %v1254_v1 = vadd.f32 %v2583_v56, %v1253_v15 }
 0x305   :  { %v839_v12 = vmax.f32 %v774_v7, 0.0  ;;  %v1113_v38 = vmax.f32 %v1014_v9, 0.0  ;;  %v1496_v42 = vpop.f32.mrf.mxu0 }
 0x306   :  { %v1387_v16 = vmax.f32 %v1254_v1, 0.0  ;;  %v1497_v53 = vadd.f32 %v2667_v48, %v1496_v42 }
 0x307   :  { %1063 = vmatmul.f32.gmra.mxu2 %v839_v12  ;;  %1303 = vmatmul.f32.gmra.mxu3 %v1113_v38 }
 0x308   :  { %1662 = vst [vmem:[#allocation2 + $0x68] sm:$0xff] %v1497_v53  ;;  %1543 = vmatmul.f32.gmra.mxu0 %v1387_v16 }
 0x30a   :  { %v1016_v40 = vpop.f32.mrf.mxu2 }
 0x30b   :  { %v1017_v32 = vadd.f32 %v2685_v21, %v1016_v40  ;;  %v1256_v18 = vpop.f32.mrf.mxu3 }
 0x30c   :  { %v1257_v36 = vadd.f32 %v2583_v56, %v1256_v18 }
 0x30d   :  { %v1114_v22 = vmax.f32 %v1017_v32, 0.0  ;;  %v1499_v23 = vpop.f32.mrf.mxu0 }
 0x30e   :  { %v1388_v8 = vmax.f32 %v1257_v36, 0.0  ;;  %v1500_v44 = vadd.f32 %v2667_v48, %v1499_v23 }
 0x30f   :  { %1306 = vmatmul.f32.gmra.mxu3 %v1114_v22 }
 0x310   :  { %1663 = vst [vmem:[#allocation2 + $0x70] sm:$0xff] %v1500_v44  ;;  %1546 = vmatmul.f32.gmra.mxu0 %v1388_v8 }
 0x312   :  { %v1019_v27 = vpop.f32.mrf.mxu2 }
 0x313   :  { %v1020_v60 = vadd.f32 %v2685_v21, %v1019_v27  ;;  %v1259_v55 = vpop.f32.mrf.mxu3 }
 0x314   :  { %v1260_v51 = vadd.f32 %v2583_v56, %v1259_v55 }
 0x315   :  { %v1115_v30 = vmax.f32 %v1020_v60, 0.0  ;;  %v1502_v33 = vpop.f32.mrf.mxu0 }
 0x316   :  { %v1389_v5 = vmax.f32 %v1260_v51, 0.0  ;;  %v1503_v35 = vadd.f32 %v2667_v48, %v1502_v33 }
 0x317   :  { %1309 = vmatmul.f32.gmra.mxu3 %v1115_v30 }
 0x318   :  { %1664 = vst [vmem:[#allocation2 + $0x78] sm:$0xff] %v1503_v35  ;;  %1549 = vmatmul.f32.gmra.mxu0 %v1389_v5 }
 0x31a   :  { %v1022_v37 = vpop.f32.mrf.mxu2 }
 0x31b   :  { %v1023_v14 = vadd.f32 %v2685_v21, %v1022_v37  ;;  %v1262_v39 = vpop.f32.mrf.mxu3 }
 0x31c   :  { %v1263_v50 = vadd.f32 %v2583_v56, %v1262_v39 }
 0x31d   :  { %v1116_v41 = vmax.f32 %v1023_v14, 0.0  ;;  %v1505_v43 = vpop.f32.mrf.mxu0 }
 0x31e   :  { %v1390_v31 = vmax.f32 %v1263_v50, 0.0  ;;  %v1506_v2 = vadd.f32 %v2667_v48, %v1505_v43 }
 0x31f   :  { %1312 = vmatmul.f32.gmra.mxu3 %v1116_v41 }
 0x320   :  { %1665 = vst [vmem:[#allocation2 + $0x80] sm:$0xff] %v1506_v2  ;;  %1552 = vmatmul.f32.gmra.mxu0 %v1390_v31 }
 0x322   :  { %v1025_v45 = vpop.f32.mrf.mxu2 }
 0x323   :  { %v1026_v59 = vadd.f32 %v2685_v21, %v1025_v45  ;;  %v1265_v47 = vpop.f32.mrf.mxu3 }
 0x324   :  { %v1266_v17 = vadd.f32 %v2583_v56, %v1265_v47 }
 0x325   :  { %v1117_v46 = vmax.f32 %v1026_v59, 0.0  ;;  %v1508_v20 = vpop.f32.mrf.mxu0 }
 0x326   :  { %v1391_v57 = vmax.f32 %v1266_v17, 0.0  ;;  %v1509_v54 = vadd.f32 %v2667_v48, %v1508_v20 }
 0x327   :  { %1315 = vmatmul.f32.gmra.mxu3 %v1117_v46 }
 0x328   :  { %1666 = vst [vmem:[#allocation2 + $0x88] sm:$0xff] %v1509_v54  ;;  %1555 = vmatmul.f32.gmra.mxu0 %v1391_v57 }
 0x32a   :  { %v1028_v11 = vpop.f32.mrf.mxu2 }
 0x32b   :  { %v1029_v19 = vadd.f32 %v2685_v21, %v1028_v11  ;;  %v1268_v13 = vpop.f32.mrf.mxu3 }
 0x32c   :  { %v1269_v25 = vadd.f32 %v2583_v56, %v1268_v13 }
 0x32d   :  { %v1118_v49 = vmax.f32 %v1029_v19, 0.0  ;;  %v1511_v58 = vpop.f32.mrf.mxu0 }
 0x32e   :  { %v1392_v10 = vmax.f32 %v1269_v25, 0.0  ;;  %v1512_v26 = vadd.f32 %v2667_v48, %v1511_v58 }
 0x32f   :  { %1318 = vmatmul.f32.gmra.mxu3 %v1118_v49 }
 0x330   :  { %1667 = vst [vmem:[#allocation2 + $0x90] sm:$0xff] %v1512_v26  ;;  %1558 = vmatmul.f32.gmra.mxu0 %v1392_v10 }
 0x332   :  { %v1031_v0 = vpop.f32.mrf.mxu2 }
 0x333   :  { %v1032_v61 = vadd.f32 %v2685_v21, %v1031_v0  ;;  %v1271_v62 = vpop.f32.mrf.mxu3 }
 0x334   :  { %v1272_v63 = vadd.f32 %v2583_v56, %v1271_v62 }
 0x335   :  { %v1119_v29 = vmax.f32 %v1032_v61, 0.0  ;;  %v1514_v3 = vpop.f32.mrf.mxu0 }
 0x336   :  { %v1393_v34 = vmax.f32 %v1272_v63, 0.0  ;;  %v1515_v4 = vadd.f32 %v2667_v48, %v1514_v3 }
 0x337   :  { %1321 = vmatmul.f32.gmra.mxu3 %v1119_v29 }
 0x338   :  { %1668 = vst [vmem:[#allocation2 + $0x98] sm:$0xff] %v1515_v4  ;;  %1561 = vmatmul.f32.gmra.mxu0 %v1393_v34 }
 0x33a   :  { %v1034_v28 = vpop.f32.mrf.mxu2 }
 0x33b   :  { %v1035_v24 = vadd.f32 %v2685_v21, %v1034_v28  ;;  %v1274_v52 = vpop.f32.mrf.mxu3 }
 0x33c   :  { %v1275_v7 = vadd.f32 %v2752_v6, %v1274_v52 }
 0x33d   :  { %v1120_v56 = vmax.f32 %v1035_v24, 0.0  ;;  %v1517_v9 = vpop.f32.mrf.mxu0 }
 0x33e   :  { %v1394_v15 = vmax.f32 %v1275_v7, 0.0  ;;  %v1518_v1 = vadd.f32 %v2667_v48, %v1517_v9 }
 0x33f   :  { %1324 = vmatmul.f32.gmra.mxu3 %v1120_v56 }
 0x340   :  { %1669 = vst [vmem:[#allocation2 + $0xa0] sm:$0xff] %v1518_v1  ;;  %1564 = vmatmul.f32.gmra.mxu0 %v1394_v15 }
 0x342   :  { %v1037_v12 = vpop.f32.mrf.mxu2 }
 0x343   :  { %v1038_v38 = vadd.f32 %v2685_v21, %v1037_v12  ;;  %v1277_v42 = vpop.f32.mrf.mxu3 }
 0x344   :  { %v1278_v16 = vadd.f32 %v2752_v6, %v1277_v42 }
 0x345   :  { %v1121_v53 = vmax.f32 %v1038_v38, 0.0  ;;  %v1520_v40 = vpop.f32.mrf.mxu0 }
 0x346   :  { %v1395_v32 = vmax.f32 %v1278_v16, 0.0  ;;  %v1521_v18 = vadd.f32 %v2667_v48, %v1520_v40 }
 0x347   :  { %1327 = vmatmul.f32.gmra.mxu3 %v1121_v53 }
 0x348   :  { %1670 = vst [vmem:[#allocation2 + $0xa8] sm:$0xff] %v1521_v18  ;;  %1567 = vmatmul.f32.gmra.mxu0 %v1395_v32 }
 0x34a   :  { %v1040_v36 = vpop.f32.mrf.mxu2 }
 0x34b   :  { %v1041_v22 = vadd.f32 %v2685_v21, %v1040_v36  ;;  %v1280_v23 = vpop.f32.mrf.mxu3 }
 0x34c   :  { %v1281_v8 = vadd.f32 %v2752_v6, %v1280_v23 }
 0x34d   :  { %v1122_v44 = vmax.f32 %v1041_v22, 0.0  ;;  %v1523_v27 = vpop.f32.mrf.mxu0 }
 0x34e   :  { %v1396_v60 = vmax.f32 %v1281_v8, 0.0  ;;  %v1524_v55 = vadd.f32 %v2667_v48, %v1523_v27 }
 0x34f   :  { %1330 = vmatmul.f32.gmra.mxu3 %v1122_v44 }
 0x350   :  { %1671 = vst [vmem:[#allocation2 + $0xb0] sm:$0xff] %v1524_v55  ;;  %1570 = vmatmul.f32.gmra.mxu0 %v1396_v60 }
 0x352   :  { %v1043_v51 = vpop.f32.mrf.mxu2 }
 0x353   :  { %v1044_v30 = vadd.f32 %v2685_v21, %v1043_v51  ;;  %v1283_v33 = vpop.f32.mrf.mxu3 }
 0x354   :  { %v1284_v5 = vadd.f32 %v2752_v6, %v1283_v33 }
 0x355   :  { %v1123_v35 = vmax.f32 %v1044_v30, 0.0  ;;  %v1526_v37 = vpop.f32.mrf.mxu0 }
 0x356   :  { %v1397_v14 = vmax.f32 %v1284_v5, 0.0  ;;  %v1527_v39 = vadd.f32 %v2667_v48, %v1526_v37 }
 0x357   :  { %1333 = vmatmul.f32.gmra.mxu3 %v1123_v35 }
 0x358   :  { %1672 = vst [vmem:[#allocation2 + $0xb8] sm:$0xff] %v1527_v39  ;;  %1573 = vmatmul.f32.gmra.mxu0 %v1397_v14 }
 0x35a   :  { %v1046_v50 = vpop.f32.mrf.mxu2 }
 0x35b   :  { %v1047_v41 = vadd.f32 %v2685_v21, %v1046_v50  ;;  %v1286_v43 = vpop.f32.mrf.mxu3 }
 0x35c   :  { %v1287_v31 = vadd.f32 %v2752_v6, %v1286_v43 }
 0x35d   :  { %v1124_v2 = vmax.f32 %v1047_v41, 0.0  ;;  %v1529_v45 = vpop.f32.mrf.mxu0 }
 0x35e   :  { %v1398_v59 = vmax.f32 %v1287_v31, 0.0  ;;  %v1530_v47 = vadd.f32 %v2667_v48, %v1529_v45 }
 0x35f   :  { %1336 = vmatmul.f32.gmra.mxu3 %v1124_v2 }
 0x360   :  { %1673 = vst [vmem:[#allocation2 + $0xc0] sm:$0xff] %v1530_v47  ;;  %1576 = vmatmul.f32.gmra.mxu0 %v1398_v59 }
 0x362   :  { %v1049_v17 = vpop.f32.mrf.mxu2 }
 0x363   :  { %v1050_v46 = vadd.f32 %v2685_v21, %v1049_v17  ;;  %v1289_v20 = vpop.f32.mrf.mxu3 }
 0x364   :  { %v1290_v57 = vadd.f32 %v2752_v6, %v1289_v20 }
 0x365   :  { %v1125_v54 = vmax.f32 %v1050_v46, 0.0  ;;  %v1532_v11 = vpop.f32.mrf.mxu0 }
 0x366   :  { %v1399_v19 = vmax.f32 %v1290_v57, 0.0  ;;  %v1533_v13 = vadd.f32 %v2667_v48, %v1532_v11 }
 0x367   :  { %1339 = vmatmul.f32.gmra.mxu3 %v1125_v54 }
 0x368   :  { %1674 = vst [vmem:[#allocation2 + $0xc8] sm:$0xff] %v1533_v13  ;;  %1579 = vmatmul.f32.gmra.mxu0 %v1399_v19 }
 0x36a   :  { %v1052_v25 = vpop.f32.mrf.mxu2 }
 0x36b   :  { %v1053_v49 = vadd.f32 %v2685_v21, %v1052_v25  ;;  %v1292_v58 = vpop.f32.mrf.mxu3 }
 0x36c   :  { %v1293_v10 = vadd.f32 %v2752_v6, %v1292_v58 }
 0x36d   :  { %v1126_v26 = vmax.f32 %v1053_v49, 0.0  ;;  %v1535_v0 = vpop.f32.mrf.mxu0 }
 0x36e   :  { %v1400_v61 = vmax.f32 %v1293_v10, 0.0  ;;  %v1536_v62 = vadd.f32 %v2667_v48, %v1535_v0 }
 0x36f   :  { %1342 = vmatmul.f32.gmra.mxu3 %v1126_v26 }
 0x370   :  { %1675 = vst [vmem:[#allocation2 + $0xd0] sm:$0xff] %v1536_v62  ;;  %1582 = vmatmul.f32.gmra.mxu0 %v1400_v61 }
 0x372   :  { %v1055_v63 = vpop.f32.mrf.mxu2 }
 0x373   :  { %v1056_v29 = vadd.f32 %v2685_v21, %v1055_v63  ;;  %v1295_v3 = vpop.f32.mrf.mxu3 }
 0x374   :  { %v1296_v34 = vadd.f32 %v2752_v6, %v1295_v3 }
 0x375   :  { %v1127_v4 = vmax.f32 %v1056_v29, 0.0  ;;  %v1538_v28 = vpop.f32.mrf.mxu0 }
 0x376   :  { %v1401_v24 = vmax.f32 %v1296_v34, 0.0  ;;  %v1539_v52 = vadd.f32 %v2667_v48, %v1538_v28 }
 0x377   :  { %1345 = vmatmul.f32.gmra.mxu3 %v1127_v4 }
 0x378   :  { %1676 = vst [vmem:[#allocation2 + $0xd8] sm:$0xff] %v1539_v52  ;;  %1585 = vmatmul.f32.gmra.mxu0 %v1401_v24 }
 0x37a   :  { %v1058_v7 = vpop.f32.mrf.mxu2 }
 0x37b   :  { %v1059_v56 = vadd.f32 %v2685_v21, %v1058_v7  ;;  %v1298_v9 = vpop.f32.mrf.mxu3 }
 0x37c   :  { %v1299_v15 = vadd.f32 %v2752_v6, %v1298_v9 }
 0x37d   :  { %v1128_v1 = vmax.f32 %v1059_v56, 0.0  ;;  %v1541_v12 = vpop.f32.mrf.mxu0 }
 0x37e   :  { %v1402_v38 = vmax.f32 %v1299_v15, 0.0  ;;  %v1542_v42 = vadd.f32 %v2667_v48, %v1541_v12 }
 0x37f   :  { %1348 = vmatmul.f32.gmra.mxu3 %v1128_v1 }
 0x380   :  { %1677 = vst [vmem:[#allocation2 + $0xe0] sm:$0xff] %v1542_v42  ;;  %1588 = vmatmul.f32.gmra.mxu0 %v1402_v38 }
 0x382   :  { %v1061_v16 = vpop.f32.mrf.mxu2 }
 0x383   :  { %v1062_v53 = vadd.f32 %v2685_v21, %v1061_v16  ;;  %v1301_v40 = vpop.f32.mrf.mxu3 }
 0x384   :  { %v1302_v32 = vadd.f32 %v2752_v6, %v1301_v40 }
 0x385   :  { %v1129_v18 = vmax.f32 %v1062_v53, 0.0  ;;  %v1544_v36 = vpop.f32.mrf.mxu0 }
 0x386   :  { %v1403_v22 = vmax.f32 %v1302_v32, 0.0  ;;  %v1545_v23 = vadd.f32 %v2667_v48, %v1544_v36 }
 0x387   :  { %1351 = vmatmul.f32.gmra.mxu3 %v1129_v18 }
 0x388   :  { %1678 = vst [vmem:[#allocation2 + $0xe8] sm:$0xff] %v1545_v23  ;;  %1591 = vmatmul.f32.gmra.mxu0 %v1403_v22 }
 0x38a   :  { %v1064_v8 = vpop.f32.mrf.mxu2 }
 0x38b   :  { %v1065_v44 = vadd.f32 %v2685_v21, %v1064_v8  ;;  %v1304_v27 = vpop.f32.mrf.mxu3 }
 0x38c   :  { %v1305_v60 = vadd.f32 %v2752_v6, %v1304_v27 }
 0x38d   :  { %v1130_v55 = vmax.f32 %v1065_v44, 0.0  ;;  %v1547_v51 = vpop.f32.mrf.mxu0 }
 0x38e   :  { %v1404_v30 = vmax.f32 %v1305_v60, 0.0  ;;  %v1548_v33 = vadd.f32 %v2667_v48, %v1547_v51 }
 0x38f   :  { %1354 = vmatmul.f32.gmra.mxu3 %v1130_v55 }
 0x390   :  { %1679 = vst [vmem:[#allocation2 + $0xf0] sm:$0xff] %v1548_v33  ;;  %1594 = vmatmul.f32.gmra.mxu0 %v1404_v30 }
 0x393   :  { %v1307_v5 = vpop.f32.mrf.mxu3 }
 0x394   :  { %v1308_v35 = vadd.f32 %v2752_v6, %v1307_v5 }
 0x395   :  { %v1550_v37 = vpop.f32.mrf.mxu0 }
 0x396   :  { %v1405_v14 = vmax.f32 %v1308_v35, 0.0  ;;  %v1551_v39 = vadd.f32 %v2667_v48, %v1550_v37 }
 0x398   :  { %1680 = vst [vmem:[#allocation2 + $0xf8] sm:$0xff] %v1551_v39  ;;  %1597 = vmatmul.f32.gmra.mxu0 %v1405_v14 }
 0x39b   :  { %v1310_v21 = vpop.f32.mrf.mxu3 }
 0x39c   :  { %v1311_v50 = vadd.f32 %v2752_v6, %v1310_v21 }
 0x39d   :  { %v1553_v41 = vpop.f32.mrf.mxu0 }
 0x39e   :  { %v1406_v43 = vmax.f32 %v1311_v50, 0.0  ;;  %v1554_v31 = vadd.f32 %v2667_v48, %v1553_v41 }
 0x3a0   :  { %1681 = vst [vmem:[#allocation2 + $0x100] sm:$0xff] %v1554_v31  ;;  %1600 = vmatmul.f32.gmra.mxu0 %v1406_v43 }
 0x3a3   :  { %v1313_v2 = vpop.f32.mrf.mxu3 }
 0x3a4   :  { %v1314_v45 = vadd.f32 %v2752_v6, %v1313_v2 }
 0x3a5   :  { %v1556_v59 = vpop.f32.mrf.mxu0 }
 0x3a6   :  { %v1407_v47 = vmax.f32 %v1314_v45, 0.0  ;;  %v1557_v17 = vadd.f32 %v2667_v48, %v1556_v59 }
 0x3a8   :  { %1682 = vst [vmem:[#allocation2 + $0x108] sm:$0xff] %v1557_v17  ;;  %1603 = vmatmul.f32.gmra.mxu0 %v1407_v47 }
 0x3ab   :  { %v1316_v46 = vpop.f32.mrf.mxu3 }
 0x3ac   :  { %v1317_v20 = vadd.f32 %v2752_v6, %v1316_v46 }
 0x3ad   :  { %v1559_v57 = vpop.f32.mrf.mxu0 }
 0x3ae   :  { %v1408_v54 = vmax.f32 %v1317_v20, 0.0  ;;  %v1560_v11 = vadd.f32 %v2667_v48, %v1559_v57 }
 0x3b0   :  { %1683 = vst [vmem:[#allocation2 + $0x110] sm:$0xff] %v1560_v11  ;;  %1606 = vmatmul.f32.gmra.mxu0 %v1408_v54 }
 0x3b3   :  { %v1319_v19 = vpop.f32.mrf.mxu3 }
 0x3b4   :  { %v1320_v13 = vadd.f32 %v2752_v6, %v1319_v19 }
 0x3b5   :  { %v1562_v25 = vpop.f32.mrf.mxu0 }
 0x3b6   :  { %v1409_v49 = vmax.f32 %v1320_v13, 0.0  ;;  %v1563_v58 = vadd.f32 %v2667_v48, %v1562_v25  ;;  %v1829_v25 = vld [vmem:[%s2827_s2 + $0x4] ss:$0 sm:$0xff]  ;;  %s1856_s2 = smov [#allocation2]  }
 0x3b7   :  { %s1717_s19 = sshll.u32 %s1856_s2, 4  ;;  %s1718_s19 = int_to_ptr.vmem [resolvable:$true] %s1717_s19 }
 0x3b8   :  { %1684 = vst [vmem:[#allocation2 + $0x118] sm:$0xff] %v1563_v58  ;;  %1609 = vmatmul.f32.gmra.mxu0 %v1409_v49 }
 0x3bb   :  { %v1322_v10 = vpop.f32.mrf.mxu3 }
 0x3bc   :  { %v1323_v26 = vadd.f32 %v2752_v6, %v1322_v10 }
 0x3bd   :  { %v1565_v0 = vpop.f32.mrf.mxu0 }
 0x3be   :  { %v1410_v61 = vmax.f32 %v1323_v26, 0.0  ;;  %v1566_v62 = vadd.f32 %v2667_v48, %v1565_v0 }
 0x3c0   :  { %1685 = vst [vmem:[#allocation2 + $0x120] sm:$0xff] %v1566_v62  ;;  %1612 = vmatmul.f32.gmra.mxu0 %v1410_v61 }
 0x3c3   :  { %v1325_v63 = vpop.f32.mrf.mxu3 }
 0x3c4   :  { %v1326_v29 = vadd.f32 %v2752_v6, %v1325_v63 }
 0x3c5   :  { %v1568_v3 = vpop.f32.mrf.mxu0 }
 0x3c6   :  { %v1411_v34 = vmax.f32 %v1326_v29, 0.0  ;;  %v1569_v4 = vadd.f32 %v2667_v48, %v1568_v3 }
 0x3c8   :  { %1686 = vst [vmem:[#allocation2 + $0x128] sm:$0xff] %v1569_v4  ;;  %1615 = vmatmul.f32.gmra.mxu0 %v1411_v34 }
 0x3cb   :  { %v1328_v28 = vpop.f32.mrf.mxu3 }
 0x3cc   :  { %v1329_v24 = vadd.f32 %v2752_v6, %v1328_v28 }
 0x3cd   :  { %v1571_v52 = vpop.f32.mrf.mxu0 }
 0x3ce   :  { %v1412_v7 = vmax.f32 %v1329_v24, 0.0  ;;  %v1572_v56 = vadd.f32 %v2667_v48, %v1571_v52 }
 0x3d0   :  { %1687 = vst [vmem:[#allocation2 + $0x130] sm:$0xff] %v1572_v56  ;;  %1618 = vmatmul.f32.gmra.mxu0 %v1412_v7 }
 0x3d3   :  { %v1331_v9 = vpop.f32.mrf.mxu3 }
 0x3d4   :  { %v1332_v15 = vadd.f32 %v2752_v6, %v1331_v9 }
 0x3d5   :  { %v1574_v1 = vpop.f32.mrf.mxu0 }
 0x3d6   :  { %v1413_v12 = vmax.f32 %v1332_v15, 0.0  ;;  %v1575_v38 = vadd.f32 %v2667_v48, %v1574_v1 }
 0x3d8   :  { %1688 = vst [vmem:[#allocation2 + $0x138] sm:$0xff] %v1575_v38  ;;  %1621 = vmatmul.f32.gmra.mxu0 %v1413_v12 }
 0x3db   :  { %v1334_v42 = vpop.f32.mrf.mxu3 }
 0x3dc   :  { %v1335_v16 = vadd.f32 %v2752_v6, %v1334_v42 }
 0x3dd   :  { %v1577_v53 = vpop.f32.mrf.mxu0 }
 0x3de   :  { %v1414_v40 = vmax.f32 %v1335_v16, 0.0  ;;  %v1578_v32 = vadd.f32 %v2667_v48, %v1577_v53 }
 0x3e0   :  { %1689 = vst [vmem:[#allocation2 + $0x140] sm:$0xff] %v1578_v32  ;;  %1624 = vmatmul.f32.gmra.mxu0 %v1414_v40 }
 0x3e3   :  { %v1337_v18 = vpop.f32.mrf.mxu3 }
 0x3e4   :  { %v1338_v36 = vadd.f32 %v2752_v6, %v1337_v18 }
 0x3e5   :  { %v1580_v22 = vpop.f32.mrf.mxu0 }
 0x3e6   :  { %v1415_v23 = vmax.f32 %v1338_v36, 0.0  ;;  %v1581_v8 = vadd.f32 %v2667_v48, %v1580_v22 }
 0x3e8   :  { %1690 = vst [vmem:[#allocation2 + $0x148] sm:$0xff] %v1581_v8  ;;  %1627 = vmatmul.f32.gmra.mxu0 %v1415_v23 }
 0x3eb   :  { %v1340_v44 = vpop.f32.mrf.mxu3 }
 0x3ec   :  { %v1341_v27 = vadd.f32 %v2752_v6, %v1340_v44 }
 0x3ed   :  { %v1583_v60 = vpop.f32.mrf.mxu0 }
 0x3ee   :  { %v1416_v55 = vmax.f32 %v1341_v27, 0.0  ;;  %v1584_v51 = vadd.f32 %v2667_v48, %v1583_v60 }
 0x3f0   :  { %1691 = vst [vmem:[#allocation2 + $0x150] sm:$0xff] %v1584_v51  ;;  %1630 = vmatmul.f32.gmra.mxu0 %v1416_v55 }
 0x3f3   :  { %v1343_v30 = vpop.f32.mrf.mxu3 }
 0x3f4   :  { %v1344_v33 = vadd.f32 %v2752_v6, %v1343_v30 }
 0x3f5   :  { %v1586_v5 = vpop.f32.mrf.mxu0 }
 0x3f6   :  { %v1417_v35 = vmax.f32 %v1344_v33, 0.0  ;;  %v1587_v37 = vadd.f32 %v2667_v48, %v1586_v5 }
 0x3f8   :  { %1692 = vst [vmem:[#allocation2 + $0x158] sm:$0xff] %v1587_v37  ;;  %1633 = vmatmul.f32.gmra.mxu0 %v1417_v35 }
 0x3fb   :  { %v1346_v14 = vpop.f32.mrf.mxu3 }
 0x3fc   :  { %v1347_v39 = vadd.f32 %v2752_v6, %v1346_v14 }
 0x3fd   :  { %v1589_v21 = vpop.f32.mrf.mxu0 }
 0x3fe   :  { %v1418_v50 = vmax.f32 %v1347_v39, 0.0  ;;  %v1590_v41 = vadd.f32 %v2667_v48, %v1589_v21 }
 0x400   :  { %1693 = vst [vmem:[#allocation2 + $0x160] sm:$0xff] %v1590_v41  ;;  %1636 = vmatmul.f32.gmra.mxu0 %v1418_v50 }
 0x403   :  { %v1349_v43 = vpop.f32.mrf.mxu3 }
 0x404   :  { %v1350_v31 = vadd.f32 %v2752_v6, %v1349_v43 }
 0x405   :  { %v1592_v2 = vpop.f32.mrf.mxu0 }
 0x406   :  { %v1419_v45 = vmax.f32 %v1350_v31, 0.0  ;;  %v1593_v59 = vadd.f32 %v2667_v48, %v1592_v2 }
 0x408   :  { %1694 = vst [vmem:[#allocation2 + $0x168] sm:$0xff] %v1593_v59  ;;  %1639 = vmatmul.f32.gmra.mxu0 %v1419_v45 }
 0x40b   :  { %v1352_v47 = vpop.f32.mrf.mxu3 }
 0x40c   :  { %v1353_v17 = vadd.f32 %v2752_v6, %v1352_v47 }
 0x40d   :  { %v1595_v46 = vpop.f32.mrf.mxu0 }
 0x40e   :  { %v1420_v20 = vmax.f32 %v1353_v17, 0.0  ;;  %v1596_v57 = vadd.f32 %v2667_v48, %v1595_v46 }
 0x410   :  { %1695 = vst [vmem:[#allocation2 + $0x170] sm:$0xff] %v1596_v57  ;;  %1642 = vmatmul.f32.vlgmr.msra.gmra.mxu3 %v1420_v20 }
 0x413   :  { %v1355_v54 = vpop.f32.mrf.mxu3 }
 0x414   :  { %v1356_v11 = vadd.f32 %v2752_v6, %v1355_v54 }
 0x415   :  { %v1598_v19 = vpop.f32.mrf.mxu0 }
 0x416   :  { %v1421_v13 = vmax.f32 %v1356_v11, 0.0  ;;  %v1599_v49 = vadd.f32 %v1829_v25, %v1598_v19 }
 0x418   :  { %1696 = vst [vmem:[#allocation2 + $0x178] sm:$0xff] %v1599_v49  ;;  %1645 = vmatmul.f32.gmra.mxu3 %v1421_v13 }
 0x41d   :  { %v1601_v58 = vpop.f32.mrf.mxu0 }
 0x41e   :  { %v1602_v10 = vadd.f32 %v1829_v25, %v1601_v58 }
 0x420   :  { %1697 = vst [vmem:[#allocation2 + $0x180] sm:$0xff] %v1602_v10 }
 0x425   :  { %v1604_v26 = vpop.f32.mrf.mxu0 }
 0x426   :  { %v1605_v0 = vadd.f32 %v1829_v25, %v1604_v26 }
 0x428   :  { %1698 = vst [vmem:[#allocation2 + $0x188] sm:$0xff] %v1605_v0 }
 0x42d   :  { %v1607_v48 = vpop.f32.mrf.mxu0 }
 0x42e   :  { %v1608_v61 = vadd.f32 %v1829_v25, %v1607_v48 }
 0x430   :  { %1699 = vst [vmem:[#allocation2 + $0x190] sm:$0xff] %v1608_v61 }
 0x435   :  { %v1610_v62 = vpop.f32.mrf.mxu0 }
 0x436   :  { %v1611_v6 = vadd.f32 %v1829_v25, %v1610_v62 }
 0x438   :  { %1700 = vst [vmem:[#allocation2 + $0x198] sm:$0xff] %v1611_v6 }
 0x43d   :  { %v1613_v63 = vpop.f32.mrf.mxu0 }
 0x43e   :  { %v1614_v29 = vadd.f32 %v1829_v25, %v1613_v63 }
 0x440   :  { %1701 = vst [vmem:[#allocation2 + $0x1a0] sm:$0xff] %v1614_v29 }
 0x445   :  { %v1616_v3 = vpop.f32.mrf.mxu0 }
 0x446   :  { %v1617_v34 = vadd.f32 %v1829_v25, %v1616_v3 }
 0x448   :  { %1702 = vst [vmem:[#allocation2 + $0x1a8] sm:$0xff] %v1617_v34 }
 0x44d   :  { %v1619_v4 = vpop.f32.mrf.mxu0 }
 0x44e   :  { %v1620_v28 = vadd.f32 %v1829_v25, %v1619_v4 }
 0x450   :  { %1703 = vst [vmem:[#allocation2 + $0x1b0] sm:$0xff] %v1620_v28 }
 0x455   :  { %v1622_v24 = vpop.f32.mrf.mxu0 }
 0x456   :  { %v1623_v52 = vadd.f32 %v1829_v25, %v1622_v24 }
 0x458   :  { %1704 = vst [vmem:[#allocation2 + $0x1b8] sm:$0xff] %v1623_v52 }
 0x45d   :  { %v1625_v7 = vpop.f32.mrf.mxu0 }
 0x45e   :  { %v1626_v56 = vadd.f32 %v1829_v25, %v1625_v7 }
 0x460   :  { %1705 = vst [vmem:[#allocation2 + $0x1c0] sm:$0xff] %v1626_v56 }
 0x465   :  { %v1628_v9 = vpop.f32.mrf.mxu0 }
 0x466   :  { %v1629_v15 = vadd.f32 %v1829_v25, %v1628_v9 }
 0x468   :  { %1706 = vst [vmem:[#allocation2 + $0x1c8] sm:$0xff] %v1629_v15 }
 0x46d   :  { %v1631_v1 = vpop.f32.mrf.mxu0 }
 0x46e   :  { %v1632_v12 = vadd.f32 %v1829_v25, %v1631_v1 }
 0x470   :  { %1707 = vst [vmem:[#allocation2 + $0x1d0] sm:$0xff] %v1632_v12 }
 0x475   :  { %v1634_v38 = vpop.f32.mrf.mxu0 }
 0x476   :  { %v1635_v42 = vadd.f32 %v1829_v25, %v1634_v38 }
 0x478   :  { %1708 = vst [vmem:[#allocation2 + $0x1d8] sm:$0xff] %v1635_v42 }
 0x47d   :  { %v1637_v16 = vpop.f32.mrf.mxu0 }
 0x47e   :  { %v1638_v53 = vadd.f32 %v1829_v25, %v1637_v16 }
 0x480   :  { %1709 = vst [vmem:[#allocation2 + $0x1e0] sm:$0xff] %v1638_v53 }
 0x485   :  { %v1640_v40 = vpop.f32.mrf.mxu0 }
 0x486   :  { %v1641_v32 = vadd.f32 %v1829_v25, %v1640_v40 }
 0x488   :  { %1710 = vst [vmem:[#allocation2 + $0x1e8] sm:$0xff] %v1641_v32 }
 0x493   :  { %v1643_v18 = vpop.f32.mrf.mxu3 }
 0x494   :  { %v1644_v36 = vadd.f32 %v1829_v25, %v1643_v18 }
 0x496   :  { %1711 = vst [vmem:[#allocation2 + $0x1f0] sm:$0xff] %v1644_v36 }
 0x49b   :  { %v1646_v22 = vpop.f32.mrf.mxu3 }
 0x49c   :  { %v1647_v23 = vadd.f32 %v1829_v25, %v1646_v22 }
 0x49e   :  { %1712 = vst [vmem:[#allocation2 + $0x1f8] sm:$0xff] %v1647_v23 }
 0x49f   :  { %1725 = dma.vmem_to_hbm [thread:$0]  %s1718_s19, 8192, %s1720_s22, [#allocation3], %s1857_s23, %s1857_s23, %s1858_s24  }
 0x4a0   :  { %1854 = dma.done.wait [#allocation3], 8192  }
 0x4a1   :  { %1855 = vsyncadd [#allocation3], 4294959104 }
 0x4a2   :  { %1730 = vsyncpa [#allocation3], 1 }

</bundles_post_ra>
